<compile_context>
chip_gen: v5e
topology: v5e:2x2
jax: 0.10.0
libtpu: 0.0.40
codegen_flags: <defaults>
</compile_context>

<pallas_src>
import math
from types import SimpleNamespace

import jax
import jax.numpy as jnp
from jax.experimental import pallas as pl
from jax.experimental.pallas import tpu as pltpu

NU = 0.01 / math.pi
_PREC = jax.lax.Precision.HIGHEST
_F32 = jnp.float32


def _round_up(x, m):
    return -(-x // m) * m


# --------------------------------------------------------------------------- #
# Kernel
# --------------------------------------------------------------------------- #
def _make_burgers_kernel(L, Hp, HW, NFp, VW, nu):
    """Kernel for an MLP with L linear layers.

    Hp  : padded feature rows of the weight blocks / scratch (= HW + 8)
    HW  : padded max layer width (multiple of 8); also the bias-row index
    Fused lane layout of the scratch (lane width FW = VW + 3*NFp):
      [ value: collocation(NFp) | IC/BC/pad (VW-NFp) | d/dx(NFp) | d/dt(NFp) | d2/dx2(NFp) ]
    Scratch row layout: rows [0:HW) = activations / derivative streams,
    rows [HW:Hp) = constant bias row (1 on value lanes, 0 on derivative lanes).
    """
    FW = VW + 3 * NFp
    BR = HW  # bias-row index (also the bias column index in every weight block)

    def kernel(pts_ref, w_ref, out_ref, h_ref):
        # ---- constant bias-row tile (written once, never clobbered) ----
        h_ref[HW:Hp, 0:VW] = jnp.ones((Hp - HW, VW), _F32)
        h_ref[HW:Hp, VW:FW] = jnp.zeros((Hp - HW, FW - VW), _F32)

        # ---- layer 0: input dim 2 -> two VPU broadcast-FMAs, no MXU pass ----
        w0x = w_ref[0:HW, 0:1]                    # dz/dx of input = W0 column 0
        w0t = w_ref[0:HW, 1:2]                    # dz/dt of input = W0 column 1
        b0 = w_ref[0:HW, BR:BR + 1]               # layer-0 bias (folded column)
        px = pts_ref[0:1, :]                      # x coords of all points (1, VW)
        pt = pts_ref[1:2, :]                      # t coords of all points (1, VW)
        z = w0x * px + w0t * pt + b0              # (HW, VW)
        a = jnp.tanh(z)
        a_c = a[:, 0:NFp]                         # collocation activations
        d1 = 1.0 - a_c * a_c                      # tanh'
        d2 = -2.0 * a_c * d1                      # tanh''
        h_ref[0:HW, 0:VW] = a
        h_ref[0:HW, VW:VW + NFp] = d1 * w0x
        h_ref[0:HW, VW + NFp:VW + 2 * NFp] = d1 * w0t
        h_ref[0:HW, VW + 2 * NFp:FW] = d2 * (w0x * w0x)   # zxx == 0 at layer 0

        # ---- hidden layers: one fused 4-stream matmul each, bias folded as K col ----
        for i in range(1, L - 1):
            Wi = w_ref[i * Hp:i * Hp + HW, :]                        # (HW, Hp)
            zf = jnp.dot(Wi, h_ref[...], preferred_element_type=_F32,
                         precision=_PREC)                             # (HW, FW)
            zv = zf[:, 0:VW]                     # bias already included via bias row
            zx = zf[:, VW:VW + NFp]
            zt = zf[:, VW + NFp:VW + 2 * NFp]
            zxx = zf[:, VW + 2 * NFp:FW]
            a = jnp.tanh(zv)
            a_c = a[:, 0:NFp]
            d1 = 1.0 - a_c * a_c
            d2 = -2.0 * a_c * d1
            h_ref[0:HW, 0:VW] = a
            h_ref[0:HW, VW:VW + NFp] = d1 * zx
            h_ref[0:HW, VW + NFp:VW + 2 * NFp] = d1 * zt
            h_ref[0:HW, VW + 2 * NFp:FW] = d2 * zx * zx + d1 * zxx

        # ---- final layer (out width 1): broadcast-multiply + sublane reduce ----
        iL = L - 1
        wl = w_ref[iL * Hp:(iL + 1) * Hp, 0:1]                       # (Hp, 1), bias at row BR
        zf = jnp.sum(wl * h_ref[...], axis=0, keepdims=True)        # (1, FW)
        u_val = zf[:, 0:VW]                       # u on all value points (+ bias)
        u_c = u_val[:, 0:NFp]                     # u on collocation points
        u_x = zf[:, VW:VW + NFp]
        u_t = zf[:, VW + NFp:VW + 2 * NFp]
        u_xx = zf[:, VW + 2 * NFp:FW]

        f = u_t + u_c * u_x - nu * u_xx           # PDE residual, (1, NFp)

        tgt = pts_ref[2:3, :]                     # u_0 targets (0 elsewhere)
        wv = pts_ref[3:4, :]                      # 1/N0, 1/Nb weights (0 elsewhere)
        wf = pts_ref[4:5, 0:NFp]                  # 1/Nf weights (0 on padding)
        diff = u_val - tgt
        out_ref[0, 0] = jnp.sum(wf * (f * f)) + jnp.sum(wv * (diff * diff))

    return kernel


# --------------------------------------------------------------------------- #
# Host-side packing (hoisted out of the per-step hot path)
# --------------------------------------------------------------------------- #
def make_config(layer_widths, NF, N0, NBl, NBr):
    assert layer_widths[0] == 2, "Burgers PINN input must be (x, t)"
    assert layer_widths[-1] == 1, "Burgers PINN output must be scalar u"
    assert NF > 0 and N0 > 0 and NBl > 0 and NBr > 0, "empty point set"
    L = len(layer_widths) - 1
    HW = _round_up(max(layer_widths), 8)          # padded max layer width
    Hp = HW + 8                                   # + one sublane tile for the bias row
    NFp = _round_up(NF, 128)                      # collocation lanes
    VW = NFp + _round_up(N0 + NBl + NBr, 128)     # value-stream lane width
    FW = VW + 3 * NFp
    return SimpleNamespace(L=L, HW=HW, Hp=Hp, NFp=NFp, VW=VW, FW=FW)


def pack_points(X_f, X_0, u_0, X_b_left, X_b_right, cfg):
    """Builds the (8, VW) point slab. Constant across training steps: call once."""
    NF, N0 = X_f.shape[0], X_0.shape[0]
    NBl, NBr = X_b_left.shape[0], X_b_right.shape[0]
    NFp, VW = cfg.NFp, cfg.VW
    RW = VW - NFp

    def pad_to(v, n):
        return jnp.pad(v.astype(_F32), (0, n - v.shape[0]))

    vpts = jnp.concatenate([X_0, X_b_left, X_b_right], axis=0).astype(_F32)
    x_row = jnp.concatenate([pad_to(X_f[:, 0], NFp), pad_to(vpts[:, 0], RW)])
    t_row = jnp.concatenate([pad_to(X_f[:, 1], NFp), pad_to(vpts[:, 1], RW)])
    tgt_row = jnp.concatenate([jnp.zeros((NFp,), _F32), pad_to(u_0[:, 0], RW)])
    wv_vals = jnp.concatenate([jnp.full((N0,), 1.0 / N0, _F32),
                               jnp.full((NBl,), 1.0 / NBl, _F32),
                               jnp.full((NBr,), 1.0 / NBr, _F32)])
    wv_row = jnp.concatenate([jnp.zeros((NFp,), _F32), pad_to(wv_vals, RW)])
    wf_row = jnp.concatenate([pad_to(jnp.full((NF,), 1.0 / NF, _F32), NFp),
                              jnp.zeros((RW,), _F32)])
    pts = jnp.stack([x_row, t_row, tgt_row, wv_row, wf_row], axis=0)   # (5, VW)
    return jnp.pad(pts, ((0, 3), (0, 0)))                              # (8, VW)


def pack_params(Ws, bs, cfg):
    """Builds the (L*Hp, Hp) weight slab (transposed weights, bias folded as a
    K column at index HW). Call once per parameter update."""
    Hp, BR = cfg.Hp, cfg.HW
    L = len(Ws)
    blocks = []
    for i, (W, b) in enumerate(zip(Ws, bs)):
        fin, fout = W.shape
        if i < L - 1:
            blk = jnp.concatenate(
                [jnp.pad(W.T.astype(_F32), ((0, 0), (0, BR - fin))),
                 b.astype(_F32)[:, None]], axis=1)                    # (fout, BR+1)
            blk = jnp.pad(blk, ((0, Hp - fout), (0, Hp - BR - 1)))    # (Hp, Hp)
        else:
            # final layer stored as a column (in, 1); bias at row BR
            col = jnp.concatenate(
                [jnp.pad(W[:, 0].astype(_F32), (0, BR - fin)),
                 b.astype(_F32)], axis=0)[:, None]                    # (BR+1, 1)
            blk = jnp.pad(col, ((0, Hp - BR - 1), (0, Hp - 1)))       # (Hp, Hp)
        blocks.append(blk)
    return jnp.concatenate(blocks, axis=0)


def burgers_loss_from_slabs(pts, wslab, cfg):
    """Per-step hot path: just the pallas_call on the pre-packed slabs."""
    vmem = pl.BlockSpec(memory_space=pltpu.MemorySpace.VMEM)
    smem = pl.BlockSpec(memory_space=pltpu.MemorySpace.SMEM)
    out = pl.pallas_call(
        _make_burgers_kernel(cfg.L, cfg.Hp, cfg.HW, cfg.NFp, cfg.VW, NU),
        out_shape=jax.ShapeDtypeStruct((1, 1), jnp.float32),
        in_specs=[vmem, vmem],
        out_specs=smem,
        scratch_shapes=[pltpu.VMEM((cfg.Hp, cfg.FW), jnp.float32)],
    )(pts, wslab)
    return out[0, 0]


def burgers_pinn_loss(X_f, X_0, u_0, X_b_left, X_b_right, Ws, bs):
    """Convenience wrapper matching the original module signature."""
    widths = [Ws[0].shape[0]] + [W.shape[1] for W in Ws]
    cfg = make_config(widths, X_f.shape[0], X_0.shape[0],
                      X_b_left.shape[0], X_b_right.shape[0])
    pts = pack_points(X_f, X_0, u_0, X_b_left, X_b_right, cfg)
    wslab = pack_params(Ws, bs, cfg)
    return burgers_loss_from_slabs(pts, wslab, cfg)


# --------------------------------------------------------------------------- #
# Pure-JAX reference (correctness check only)
# --------------------------------------------------------------------------- #
def _net_apply(Ws, bs, xt):
    h = xt
    for i, (W, b) in enumerate(zip(Ws, bs)):
        h = jnp.dot(h, W, precision=_PREC) + b
        if i < len(Ws) - 1:
            h = jnp.tanh(h)
    return h


def _ref_loss(Ws, bs, X_f, X_0, u_0, X_bl, X_br):
    def u_scalar(x, t):
        return _net_apply(Ws, bs, jnp.stack([x, t]))[0]

    xs, ts = X_f[:, 0], X_f[:, 1]
    u = jax.vmap(u_scalar)(xs, ts)
    u_x = jax.vmap(jax.grad(u_scalar, argnums=0))(xs, ts)
    u_t = jax.vmap(jax.grad(u_scalar, argnums=1))(xs, ts)
    u_xx = jax.vmap(jax.grad(jax.grad(u_scalar, argnums=0), argnums=0))(xs, ts)
    f = u_t + u * u_x - NU * u_xx
    loss_f = jnp.mean(f * f)
    loss_0 = jnp.mean((_net_apply(Ws, bs, X_0) - u_0) ** 2)
    loss_b = jnp.mean(_net_apply(Ws, bs, X_bl) ** 2) + jnp.mean(_net_apply(Ws, bs, X_br) ** 2)
    return loss_f + loss_0 + loss_b


if __name__ == "__main__":
    layers = [2, 32, 32, 1]          # [input(x,t), hidden, hidden, output(u)]
    N_f, N_0, N_b = 128, 16, 8

    key = jax.random.PRNGKey(0)

    # Deterministic parameter init (PyTorch nn.Linear default: U(-1/sqrt(fan_in), ...)).
    Ws, bs = [], []
    for i in range(len(layers) - 1):
        key, kw, kb = jax.random.split(key, 3)
        bound = 1.0 / math.sqrt(layers[i])
        Ws.append(jax.random.uniform(kw, (layers[i], layers[i + 1]), jnp.float32, -bound, bound))
        bs.append(jax.random.uniform(kb, (layers[i + 1],), jnp.float32, -bound, bound))

    key, kf, k0, ku, kl, kr = jax.random.split(key, 6)
    X_f = jax.random.uniform(kf, (N_f, 2), jnp.float32, -1.0, 1.0)
    X_0 = jax.random.uniform(k0, (N_0, 2), jnp.float32, -1.0, 1.0)
    u_0 = jax.random.uniform(ku, (N_0, 1), jnp.float32, -1.0, 1.0)
    X_b_left = jax.random.uniform(kl, (N_b, 2), jnp.float32, -1.0, 1.0)
    X_b_right = jax.random.uniform(kr, (N_b, 2), jnp.float32, -1.0, 1.0)

    # Hoisted packing: points once per dataset, params once per update step.
    cfg = make_config(layers, N_f, N_0, N_b, N_b)
    pts = pack_points(X_f, X_0, u_0, X_b_left, X_b_right, cfg)
    wslab = pack_params(Ws, bs, cfg)

    step = jax.jit(lambda p, w: burgers_loss_from_slabs(p, w, cfg))
    loss = step(pts, wslab)
    loss = jax.block_until_ready(loss)

    ref = _ref_loss(Ws, bs, X_f, X_0, u_0, X_b_left, X_b_right)
    assert jnp.allclose(loss, ref, rtol=1e-4, atol=1e-5), (loss, ref)

    print("KERNEL_OK")
</pallas_src>

<mosaic_0001>
module attributes {stable_mosaic.version = 11 : i64} {
  func.func @kernel(%arg0: memref<8x256xf32, #tpu.memory_space<vmem>>, %arg1: memref<120x40xf32, #tpu.memory_space<vmem>>, %arg2: memref<1x1xf32, #tpu.memory_space<smem>>, %arg3: memref<40x640xf32, #tpu.memory_space<vmem>>) attributes {dimension_semantics = [], scalar_prefetch = 0 : i64, scratch_operands = 1 : i64, tpu.core_type = #tpu.core_type<tc>} {
    %cst = arith.constant 1.000000e+00 : f32
    %0 = vector.broadcast %cst : f32 to vector<8x256xf32>
    %c32 = arith.constant 32 : index
    %c0 = arith.constant 0 : index
    %1 = vector.load %arg3[%c32, %c0] : memref<40x640xf32, #tpu.memory_space<vmem>>, vector<8x256xf32>
    tpu.vector_store %arg3[%c32, %c0], %0 {strides = array<i32>} : memref<40x640xf32, #tpu.memory_space<vmem>>, vector<8x256xf32>,
    %cst_0 = arith.constant 0.000000e+00 : f32
    %2 = vector.broadcast %cst_0 : f32 to vector<8x384xf32>
    %c32_1 = arith.constant 32 : index
    %c256 = arith.constant 256 : index
    %3 = vector.load %arg3[%c32_1, %c256] : memref<40x640xf32, #tpu.memory_space<vmem>>, vector<8x384xf32>
    tpu.vector_store %arg3[%c32_1, %c256], %2 {strides = array<i32>} : memref<40x640xf32, #tpu.memory_space<vmem>>, vector<8x384xf32>,
    %c0_2 = arith.constant 0 : index
    %c0_3 = arith.constant 0 : index
    %4 = vector.load %arg1[%c0_2, %c0_3] : memref<120x40xf32, #tpu.memory_space<vmem>>, vector<32x1xf32>
    %c0_4 = arith.constant 0 : index
    %c1 = arith.constant 1 : index
    %5 = vector.load %arg1[%c0_4, %c1] : memref<120x40xf32, #tpu.memory_space<vmem>>, vector<32x1xf32>
    %c0_5 = arith.constant 0 : index
    %c32_6 = arith.constant 32 : index
    %6 = vector.load %arg1[%c0_5, %c32_6] : memref<120x40xf32, #tpu.memory_space<vmem>>, vector<32x1xf32>
    %c0_7 = arith.constant 0 : index
    %c0_8 = arith.constant 0 : index
    %7 = vector.load %arg0[%c0_7, %c0_8] : memref<8x256xf32, #tpu.memory_space<vmem>>, vector<1x256xf32>
    %c1_9 = arith.constant 1 : index
    %c0_10 = arith.constant 0 : index
    %8 = vector.load %arg0[%c1_9, %c0_10] : memref<8x256xf32, #tpu.memory_space<vmem>>, vector<1x256xf32>
    %9 = vector.broadcast %4 : vector<32x1xf32> to vector<32x256xf32>
    %10 = vector.broadcast %7 : vector<1x256xf32> to vector<32x256xf32>
    %11 = arith.mulf %9, %10 : vector<32x256xf32>
    %12 = vector.broadcast %5 : vector<32x1xf32> to vector<32x256xf32>
    %13 = vector.broadcast %8 : vector<1x256xf32> to vector<32x256xf32>
    %14 = arith.mulf %12, %13 : vector<32x256xf32>
    %15 = arith.addf %11, %14 : vector<32x256xf32>
    %16 = vector.broadcast %6 : vector<32x1xf32> to vector<32x256xf32>
    %17 = arith.addf %15, %16 : vector<32x256xf32>
    %18 = math.tanh %17 : vector<32x256xf32>
    %19 = vector.extract_strided_slice %18 {offsets = [0, 0], sizes = [32, 128], strides = [1, 1]} : vector<32x256xf32> to vector<32x128xf32>
    %20 = arith.mulf %19, %19 : vector<32x128xf32>
    %cst_11 = arith.constant 1.000000e+00 : f32
    %21 = vector.broadcast %cst_11 : f32 to vector<32x128xf32>
    %22 = arith.subf %21, %20 : vector<32x128xf32>
    %cst_12 = arith.constant -2.000000e+00 : f32
    %23 = vector.broadcast %cst_12 : f32 to vector<32x128xf32>
    %24 = arith.mulf %23, %19 : vector<32x128xf32>
    %25 = arith.mulf %24, %22 : vector<32x128xf32>
    %c0_13 = arith.constant 0 : index
    %c0_14 = arith.constant 0 : index
    %26 = vector.load %arg3[%c0_13, %c0_14] : memref<40x640xf32, #tpu.memory_space<vmem>>, vector<32x256xf32>
    tpu.vector_store %arg3[%c0_13, %c0_14], %18 {strides = array<i32>} : memref<40x640xf32, #tpu.memory_space<vmem>>, vector<32x256xf32>,
    %27 = vector.broadcast %4 : vector<32x1xf32> to vector<32x128xf32>
    %28 = arith.mulf %22, %27 : vector<32x128xf32>
    %c0_15 = arith.constant 0 : index
    %c256_16 = arith.constant 256 : index
    %29 = vector.load %arg3[%c0_15, %c256_16] : memref<40x640xf32, #tpu.memory_space<vmem>>, vector<32x128xf32>
    tpu.vector_store %arg3[%c0_15, %c256_16], %28 {strides = array<i32>} : memref<40x640xf32, #tpu.memory_space<vmem>>, vector<32x128xf32>,
    %30 = vector.broadcast %5 : vector<32x1xf32> to vector<32x128xf32>
    %31 = arith.mulf %22, %30 : vector<32x128xf32>
    %c0_17 = arith.constant 0 : index
    %c384 = arith.constant 384 : index
    %32 = vector.load %arg3[%c0_17, %c384] : memref<40x640xf32, #tpu.memory_space<vmem>>, vector<32x128xf32>
    tpu.vector_store %arg3[%c0_17, %c384], %31 {strides = array<i32>} : memref<40x640xf32, #tpu.memory_space<vmem>>, vector<32x128xf32>,
    %33 = arith.mulf %4, %4 : vector<32x1xf32>
    %34 = vector.broadcast %33 : vector<32x1xf32> to vector<32x128xf32>
    %35 = arith.mulf %25, %34 : vector<32x128xf32>
    %c0_18 = arith.constant 0 : index
    %c512 = arith.constant 512 : index
    %36 = vector.load %arg3[%c0_18, %c512] : memref<40x640xf32, #tpu.memory_space<vmem>>, vector<32x128xf32>
    tpu.vector_store %arg3[%c0_18, %c512], %35 {strides = array<i32>} : memref<40x640xf32, #tpu.memory_space<vmem>>, vector<32x128xf32>,
    %c40 = arith.constant 40 : index
    %c0_19 = arith.constant 0 : index
    %37 = vector.load %arg1[%c40, %c0_19] : memref<120x40xf32, #tpu.memory_space<vmem>>, vector<32x40xf32>
    %c0_20 = arith.constant 0 : index
    %c0_21 = arith.constant 0 : index
    %38 = vector.load %arg3[%c0_20, %c0_21] : memref<40x640xf32, #tpu.memory_space<vmem>>, vector<40x640xf32>
    %cst_22 = arith.constant dense<0.000000e+00> : vector<32x640xf32>
    %39 = tpu.matmul %37, %38, %cst_22 {dimension_numbers = #tpu.dot_dimension_numbers<[1], [0], [0], [1], [0, 0, 1, 1], [], []>, precision = #tpu.contract_precision<fp32>} : vector<32x40xf32>, vector<40x640xf32>, vector<32x640xf32> -> vector<32x640xf32>
    %40 = vector.extract_strided_slice %39 {offsets = [0, 0], sizes = [32, 256], strides = [1, 1]} : vector<32x640xf32> to vector<32x256xf32>
    %41 = vector.extract_strided_slice %39 {offsets = [0, 256], sizes = [32, 128], strides = [1, 1]} : vector<32x640xf32> to vector<32x128xf32>
    %42 = vector.extract_strided_slice %39 {offsets = [0, 384], sizes = [32, 128], strides = [1, 1]} : vector<32x640xf32> to vector<32x128xf32>
    %43 = vector.extract_strided_slice %39 {offsets = [0, 512], sizes = [32, 128], strides = [1, 1]} : vector<32x640xf32> to vector<32x128xf32>
    %44 = math.tanh %40 : vector<32x256xf32>
    %45 = vector.extract_strided_slice %44 {offsets = [0, 0], sizes = [32, 128], strides = [1, 1]} : vector<32x256xf32> to vector<32x128xf32>
    %46 = arith.mulf %45, %45 : vector<32x128xf32>
    %cst_23 = arith.constant 1.000000e+00 : f32
    %47 = vector.broadcast %cst_23 : f32 to vector<32x128xf32>
    %48 = arith.subf %47, %46 : vector<32x128xf32>
    %cst_24 = arith.constant -2.000000e+00 : f32
    %49 = vector.broadcast %cst_24 : f32 to vector<32x128xf32>
    %50 = arith.mulf %49, %45 : vector<32x128xf32>
    %51 = arith.mulf %50, %48 : vector<32x128xf32>
    %c0_25 = arith.constant 0 : index
    %c0_26 = arith.constant 0 : index
    %52 = vector.load %arg3[%c0_25, %c0_26] : memref<40x640xf32, #tpu.memory_space<vmem>>, vector<32x256xf32>
    tpu.vector_store %arg3[%c0_25, %c0_26], %44 {strides = array<i32>} : memref<40x640xf32, #tpu.memory_space<vmem>>, vector<32x256xf32>,
    %53 = arith.mulf %48, %41 : vector<32x128xf32>
    %c0_27 = arith.constant 0 : index
    %c256_28 = arith.constant 256 : index
    %54 = vector.load %arg3[%c0_27, %c256_28] : memref<40x640xf32, #tpu.memory_space<vmem>>, vector<32x128xf32>
    tpu.vector_store %arg3[%c0_27, %c256_28], %53 {strides = array<i32>} : memref<40x640xf32, #tpu.memory_space<vmem>>, vector<32x128xf32>,
    %55 = arith.mulf %48, %42 : vector<32x128xf32>
    %c0_29 = arith.constant 0 : index
    %c384_30 = arith.constant 384 : index
    %56 = vector.load %arg3[%c0_29, %c384_30] : memref<40x640xf32, #tpu.memory_space<vmem>>, vector<32x128xf32>
    tpu.vector_store %arg3[%c0_29, %c384_30], %55 {strides = array<i32>} : memref<40x640xf32, #tpu.memory_space<vmem>>, vector<32x128xf32>,
    %57 = arith.mulf %51, %41 : vector<32x128xf32>
    %58 = arith.mulf %57, %41 : vector<32x128xf32>
    %59 = arith.mulf %48, %43 : vector<32x128xf32>
    %60 = arith.addf %58, %59 : vector<32x128xf32>
    %c0_31 = arith.constant 0 : index
    %c512_32 = arith.constant 512 : index
    %61 = vector.load %arg3[%c0_31, %c512_32] : memref<40x640xf32, #tpu.memory_space<vmem>>, vector<32x128xf32>
    tpu.vector_store %arg3[%c0_31, %c512_32], %60 {strides = array<i32>} : memref<40x640xf32, #tpu.memory_space<vmem>>, vector<32x128xf32>,
    %c80 = arith.constant 80 : index
    %c0_33 = arith.constant 0 : index
    %62 = vector.load %arg1[%c80, %c0_33] : memref<120x40xf32, #tpu.memory_space<vmem>>, vector<40x1xf32>
    %c0_34 = arith.constant 0 : index
    %c0_35 = arith.constant 0 : index
    %63 = vector.load %arg3[%c0_34, %c0_35] : memref<40x640xf32, #tpu.memory_space<vmem>>, vector<40x640xf32>
    %64 = vector.broadcast %62 : vector<40x1xf32> to vector<40x640xf32>
    %65 = arith.mulf %64, %63 : vector<40x640xf32>
    %cst_36 = arith.constant dense<0.000000e+00> : vector<640xf32>
    %66 = vector.multi_reduction <add>, %65, %cst_36 [0] : vector<40x640xf32> to vector<640xf32>
    %67 = vector.shape_cast %66 : vector<640xf32> to vector<1x640xf32>
    %68 = vector.extract_strided_slice %67 {offsets = [0, 0], sizes = [1, 256], strides = [1, 1]} : vector<1x640xf32> to vector<1x256xf32>
    %69 = vector.extract_strided_slice %68 {offsets = [0, 0], sizes = [1, 128], strides = [1, 1]} : vector<1x256xf32> to vector<1x128xf32>
    %70 = vector.extract_strided_slice %67 {offsets = [0, 256], sizes = [1, 128], strides = [1, 1]} : vector<1x640xf32> to vector<1x128xf32>
    %71 = vector.extract_strided_slice %67 {offsets = [0, 384], sizes = [1, 128], strides = [1, 1]} : vector<1x640xf32> to vector<1x128xf32>
    %72 = vector.extract_strided_slice %67 {offsets = [0, 512], sizes = [1, 128], strides = [1, 1]} : vector<1x640xf32> to vector<1x128xf32>
    %73 = arith.mulf %69, %70 : vector<1x128xf32>
    %74 = arith.addf %71, %73 : vector<1x128xf32>
    %cst_37 = arith.constant 0.00318309898 : f32
    %75 = vector.broadcast %cst_37 : f32 to vector<1x128xf32>
    %76 = arith.mulf %75, %72 : vector<1x128xf32>
    %77 = arith.subf %74, %76 : vector<1x128xf32>
    %c2 = arith.constant 2 : index
    %c0_38 = arith.constant 0 : index
    %78 = vector.load %arg0[%c2, %c0_38] : memref<8x256xf32, #tpu.memory_space<vmem>>, vector<1x256xf32>
    %c3 = arith.constant 3 : index
    %c0_39 = arith.constant 0 : index
    %79 = vector.load %arg0[%c3, %c0_39] : memref<8x256xf32, #tpu.memory_space<vmem>>, vector<1x256xf32>
    %c4 = arith.constant 4 : index
    %c0_40 = arith.constant 0 : index
    %80 = vector.load %arg0[%c4, %c0_40] : memref<8x256xf32, #tpu.memory_space<vmem>>, vector<1x128xf32>
    %81 = arith.subf %68, %78 : vector<1x256xf32>
    %82 = arith.mulf %77, %77 : vector<1x128xf32>
    %83 = arith.mulf %80, %82 : vector<1x128xf32>
    %84 = vector.shape_cast %83 : vector<1x128xf32> to vector<1x1x128xf32>
    %cst_41 = arith.constant dense<0.000000e+00> : vector<1xf32>
    %85 = vector.multi_reduction <add>, %84, %cst_41 [1, 2] : vector<1x1x128xf32> to vector<1xf32>
    %86 = vector.shape_cast %85 : vector<1xf32> to vector<1x1x1xf32>
    %87 = vector.extract %86[0, 0, 0] : f32 from vector<1x1x1xf32>
    %88 = arith.mulf %81, %81 : vector<1x256xf32>
    %89 = arith.mulf %79, %88 : vector<1x256xf32>
    %90 = vector.shape_cast %89 : vector<1x256xf32> to vector<1x1x256xf32>
    %cst_42 = arith.constant dense<0.000000e+00> : vector<1xf32>
    %91 = vector.multi_reduction <add>, %90, %cst_42 [1, 2] : vector<1x1x256xf32> to vector<1xf32>
    %92 = vector.shape_cast %91 : vector<1xf32> to vector<1x1x1xf32>
    %93 = vector.extract %92[0, 0, 0] : f32 from vector<1x1x1xf32>
    %94 = arith.addf %87, %93 : f32
    %c0_43 = arith.constant 0 : index
    %c0_44 = arith.constant 0 : index
    %95 = memref.load %arg2[%c0_43, %c0_44] : memref<1x1xf32, #tpu.memory_space<smem>>
    memref.store %94, %arg2[%c0_43, %c0_44] : memref<1x1xf32, #tpu.memory_space<smem>>
    return
  }
}

</mosaic_0001>

<bundles_post_ra>
// kernel: _lambda_.1
= control target key start
LH: loop header
LB: loop body
LE: loop exit
PB: predicated region body
PF: predicated region fallthrough
CT: control target
= control target key end

     0   :  { %v2044_v3 = vmov 0   ;;  %s2781_s0 = inlined_call_operand.vmem [shape: f32[8,256], index: 0, kind: input, shape index: {}]   ;;  %s2782_s1 = inlined_call_operand.vmem [shape: f32[120,40], index: 1, kind: input, shape index: {}]   ;;  %s2783_s2 = inlined_call_operand.hbm [shape: f32[1,1], index: 2, kind: output, shape index: {}]  }
   0x1   :  { %v20_v0 = vld [vmem:[%s2782_s1 + $0x18] sm:$0xff]  ;;  %v19_v1 = vld [vmem:[%s2782_s1 + $0x10] sm:$0xff]  ;;  %v18_v2 = vld [vmem:[%s2782_s1 + $0x8] sm:$0xff]  ;;  %1989 = vset.pattern.permute.xlu2 %v2044_v3  ;;  %1987 = vset.pattern.permute.xlu1 %v2044_v3 }
   0x2   :  { %7 = vsyncpa [#allocation4], 0  ;;  %1985 = vset.pattern.permute.xlu0 %v2044_v3  ;;  %36 = vperm.xlu1 %1987, %v19_v1   ;;  %v2045_v4 = vmov 1   ;;  %v17_v5 = vld [vmem:[%s2782_s1] sm:$0xff]  ;;  %v2046_v6 = vmov 32   ;;  %v169_v7 = vmul.f32 %v20_v0, %v20_v0  ;;  %v168_v8 = vmul.f32 %v19_v1, %v19_v1  ;;  %v198_v33 = vld [vmem:[%s2782_s1 + $0x28] sm:$0xff] }
   0x3   :  { %41 = vperm.xlu0 %1985, %v20_v0   ;;  %31 = vperm.xlu2 %1989, %v18_v2   ;;  %v167_v9 = vmul.f32 %v18_v2, %v18_v2  ;;  %v166_v10 = vmul.f32 %v17_v5, %v17_v5  ;;  %v21_v13 = vld [vmem:[%s2781_s0] ss:$8 sm:$0x3]  ;;  %v1965_v14 = vld [vmem:[%s2781_s0 + $0x1] ss:$8 sm:$0x3] }
   0x4   :  { %v45_v15 = vperm.slane %v21_v13, 0  ;;  %v74_v16 = vperm.slane %v1965_v14, 0  ;;  %v2047_v21 = vmov 1.0   ;;  %vm227_vm0 = vcmask 326656   ;;  %v199_v59 = vld [vmem:[%s2782_s1 + $0x30] sm:$0xff]  ;;  %s1955_s17 = sshll.u32 %s2783_s2, 4  ;;  %s1956_s17 = int_to_ptr.hbm [resolvable:$true] %s1955_s17 }
   0x5   :  { %252 = vmatpush.msra.mxu0 %v2047_v21  ;;  %v46_v34 = vperm.slane %v21_v13, 1  ;;  %v75_v35 = vperm.slane %v1965_v14, 1  ;;  %v229_v41 = vsel %vm227_vm0, %v198_v33, 0  ;;  %vm1911_vm1 = vcmask 1040384   ;;  %s2048_s21 = smov [#allocation3]  }
   0x6   :  { %v2123_v49 = vand.u32 4294901760, %v229_v41 }
   0x8   :  { %v2130_v58 = vsub.f32 %v229_v41, %v2123_v49 }
   0xa   :  { %1988 = vset.pattern.permute.xlu1 %v2045_v4 }
   0xb   :  { %1986 = vset.pattern.permute.xlu0 %v2045_v4  ;;  %1990 = vset.pattern.permute.xlu2 %v2045_v4 }
   0xc   :  { %70 = vperm.xlu0 %1986, %v20_v0   ;;  %66 = vperm.xlu1 %1988, %v19_v1  }
   0xd   :  { %62 = vperm.xlu2 %1990, %v18_v2  }
  0x14   :  { %1991 = vset.pattern.permute.xlu1 %v2046_v6  ;;  %58 = vperm.xlu0 %1986, %v17_v5  }
  0x15   :  { %1992 = vset.pattern.permute.xlu2 %v2044_v3  ;;  %107 = vperm.xlu1 %1991, %v20_v0  }
  0x16   :  { %26 = vperm.xlu2 %1992, %v17_v5  }
  0x1c   :  { %1994 = vset.pattern.permute.xlu0 %v2046_v6 }
  0x1d   :  { %103 = vperm.xlu1 %1991, %v19_v1   ;;  %95 = vperm.xlu0 %1994, %v17_v5  }
  0x1e   :  { %1993 = vset.pattern.permute.xlu2 %v2046_v6 }
  0x1f   :  { %99 = vperm.xlu2 %1993, %v18_v2  }
  0x25   :  { %1995 = vset.pattern.permute.xlu1 %v2044_v3  ;;  %1997 = vset.pattern.permute.xlu0 %v2044_v3 }
  0x26   :  { %187 = vperm.xlu1 %1995, %v169_v7   ;;  %v232_v7 = vsel %vm227_vm0, %v199_v59, 0 }
  0x27   :  { %1996 = vset.pattern.permute.xlu2 %v2044_v3 }
  0x28   :  { %182 = vperm.xlu2 %1996, %v168_v8  }
  0x2e   :  { %177 = vperm.xlu1 %1995, %v167_v9  }
  0x30   :  { %172 = vperm.xlu2 %1996, %v166_v10   ;;  %v2141_v10 = vand.u32 4294901760, %v2130_v58 }
  0x5d   :  { %v2076_v11 = vpop.permute.xlu2 %31 }
  0x5e   :  { %v51_v18 = vmul.f32 %v45_v15, %v2076_v11  ;;  %v52_v43 = vmul.f32 %v46_v34, %v2076_v11 }
  0x67   :  { %v2078_v12 = vpop.permute.xlu2 %62 }
  0x68   :  { %v80_v19 = vmul.f32 %v74_v16, %v2078_v12  ;;  %v81_v44 = vmul.f32 %v75_v35, %v2078_v12 }
  0x6a   :  { %v88_v23 = vadd.f32 %v80_v19, %v51_v18  ;;  %v89_v53 = vadd.f32 %v81_v44, %v52_v43  ;;  %v200_v19 = vld [vmem:[%s2782_s1 + $0x38] sm:$0xff] }
  0x70   :  { %v2086_v17 = vpop.permute.xlu2 %26 }
  0x71   :  { %v49_v45 = vmul.f32 %v45_v15, %v2086_v17  ;;  %v50_v60 = vmul.f32 %v46_v34, %v2086_v17 }
  0x74   :  { %v2090_v20 = vpop.permute.xlu1 %36 }
  0x75   :  { %v2093_v22 = vpop.permute.xlu0 %41  ;;  %v53_v51 = vmul.f32 %v45_v15, %v2090_v20  ;;  %v54_v55 = vmul.f32 %v46_v34, %v2090_v20 }
  0x76   :  { %v55_v32 = vmul.f32 %v45_v15, %v2093_v22  ;;  %v56_v50 = vmul.f32 %v46_v34, %v2093_v22 }
  0x79   :  { %v100_v24 = vpop.permute.xlu2 %99 }
  0x7a   :  { %v112_v25 = vadd.f32 %v100_v24, %v88_v23  ;;  %v113_v8 = vadd.f32 %v100_v24, %v89_v53  ;;  %v2155_v23 = vand.u32 4294901760, %v232_v7 }
  0x7c   :  { %1998 = vtanh.f32 %v112_v25 }
  0x7e   :  { %v2095_v26 = vpop.permute.xlu0 %70  ;;  %v2097_v27 = vpop.permute.xlu1 %66 }
  0x7f   :  { %v84_v29 = vmul.f32 %v74_v16, %v2095_v26  ;;  %v85_v46 = vmul.f32 %v75_v35, %v2095_v26  ;;  %v82_v47 = vmul.f32 %v74_v16, %v2097_v27  ;;  %v83_v52 = vmul.f32 %v75_v35, %v2097_v27 }
  0x81   :  { %v92_v38 = vadd.f32 %v84_v29, %v55_v32  ;;  %v93_v54 = vadd.f32 %v85_v46, %v56_v50  ;;  %v90_v56 = vadd.f32 %v82_v47, %v53_v51  ;;  %v91_v2 = vadd.f32 %v83_v52, %v54_v55  ;;  %v1764_v50 = vld [vmem:[%s2782_s1 + $0x58] sm:$0xff] }
  0x82   :  { %v2099_v28 = vpop.eup %1998  ;;  %v235_v32 = vsel %vm227_vm0, %v200_v19, 0  ;;  %1800 = vperm.xlu1 %1995, %v1764_v50  }
  0x83   :  { %v127_v30 = vmul.f32 %v2099_v28, %v2099_v28  ;;  %v135_v31 = vmul.f32 -2.0, %v2099_v28  ;;  %v2150_v18 = vand.u32 4294901760, %v2099_v28 }
  0x85   :  { %v2109_v36 = vsub.f32 1.0, %v127_v30  ;;  %v264_v30 = vsub.f32 %v2130_v58, %v2141_v10  ;;  %v2171_v34 = vsub.f32 %v2099_v28, %v2150_v18 }
  0x86   :  { %v2111_v37 = vpop.permute.xlu0 %58 }
  0x87   :  { %v108_v39 = vpop.permute.xlu1 %107  ;;  %v2114_v40 = vmul.f32 %v135_v31, %v2109_v36  ;;  %v78_v48 = vmul.f32 %v74_v16, %v2111_v37  ;;  %v79_v1 = vmul.f32 %v75_v35, %v2111_v37  ;;  %v2174_v35 = vsub.f32 %v232_v7, %v2155_v23 }
  0x88   :  { %v116_v42 = vadd.f32 %v108_v39, %v92_v38  ;;  %v117_v61 = vadd.f32 %v108_v39, %v93_v54  ;;  %v2178_v44 = vand.u32 4294901760, %v264_v30  ;;  %v325_v53 = vand.u32 4294901760, %v2171_v34 }
  0x89   :  { %v86_v57 = vadd.f32 %v78_v48, %v49_v45  ;;  %v87_v16 = vadd.f32 %v79_v1, %v50_v60  ;;  %v2180_v45 = vand.u32 4294901760, %v235_v32  ;;  %v2195_v54 = vand.u32 4294901760, %v2174_v35 }
  0x8a   :  { %2000 = vtanh.f32 %v116_v42 }
  0x8f   :  { %v104_v62 = vpop.permute.xlu1 %103  ;;  %v96_v63 = vpop.permute.xlu0 %95 }
  0x90   :  { %v2001_v0 = vpop.eup %2000  ;;  %v114_v3 = vadd.f32 %v104_v62, %v90_v56  ;;  %v110_v4 = vadd.f32 %v96_v63, %v86_v57  ;;  %v115_v9 = vadd.f32 %v104_v62, %v91_v2  ;;  %v111_v29 = vadd.f32 %v96_v63, %v87_v16  ;;  %v201_v2 = vld [vmem:[%s2782_s1 + $0x40] sm:$0xff] }
  0x91   :  { %v2137_v5 = vand.u32 4294901760, %v2001_v0  ;;  %v129_v6 = vmul.f32 %v2001_v0, %v2001_v0  ;;  %v137_v15 = vmul.f32 -2.0, %v2001_v0 }
  0x92   :  { %2002 = vtanh.f32 %v114_v3 }
  0x93   :  { %2004 = vtanh.f32 %v117_v61  ;;  %254 = vmatpush.msra.mxu0 %v2137_v5  ;;  %v2145_v13 = vsub.f32 %v2001_v0, %v2137_v5  ;;  %v2147_v14 = vsub.f32 1.0, %v129_v6  ;;  %v2217_v0 = vsub.f32 %v235_v32, %v2180_v45 }
  0x94   :  { %2006 = vtanh.f32 %v110_v4  ;;  %v326_v6 = vsub.f32 %v2171_v34, %v325_v53 }
  0x95   :  { %368 = vmatpush.msra.mxu2 %v2145_v13  ;;  %1972 = vmatpush.msra.mxu3 %v2145_v13  ;;  %v2160_v24 = vmul.f32 %v137_v15, %v2147_v14  ;;  %v313_v25 = vand.u32 4294901760, %v2145_v13  ;;  %2008 = vtanh.f32 %v115_v9  ;;  %v272_v9 = vsub.f32 %v2174_v35, %v2195_v54 }
  0x96   :  { %2010 = vtanh.f32 %v113_v8 }
  0x97   :  { %v314_v31 = vsub.f32 %v2145_v13, %v313_v25  ;;  %2012 = vtanh.f32 %v111_v29  ;;  %v238_v29 = vsel %vm227_vm0, %v201_v2, 0 }
  0x98   :  { %v2003_v33 = vpop.eup %2002 }
  0x99   :  { %v2005_v38 = vpop.eup %2004  ;;  %v128_v39 = vmul.f32 %v2003_v33, %v2003_v33  ;;  %v2176_v41 = vand.u32 4294901760, %v2003_v33  ;;  %v315_v43 = vand.u32 4294901760, %v314_v31  ;;  %v136_v47 = vmul.f32 -2.0, %v2003_v33 }
  0x9a   :  { %v2007_v42 = vpop.eup %2006  ;;  %v2197_v55 = vand.u32 4294901760, %v2005_v38  ;;  %v327_v31 = vand.u32 4294901760, %v326_v6 }
  0x9b   :  { %v2182_v46 = vsub.f32 1.0, %v128_v39  ;;  %256 = vmatpush.msra.mxu0 %v2176_v41  ;;  %v2186_v28 = vsub.f32 %v2003_v33, %v2176_v41  ;;  %v126_v48 = vmul.f32 %v2007_v42, %v2007_v42  ;;  %v2009_v51 = vpop.eup %2008  ;;  %1968 = vmatpush.msra.mxu1 %v315_v43  ;;  %v2191_v52 = vand.u32 4294901760, %v2007_v42 }
  0x9c   :  { %v2011_v56 = vpop.eup %2010  ;;  %v134_v60 = vmul.f32 -2.0, %v2007_v42  ;;  %v2225_v3 = vand.u32 4294901760, %v2009_v51  ;;  %v2239_v15 = vsub.f32 %v2005_v38, %v2197_v55  ;;  %v153_v38 = vmul.f32 %v2147_v14, %v2093_v22 }
  0x9d   :  { %v2200_v57 = vmul.f32 %v136_v47, %v2182_v46  ;;  %258 = vmatpush.msra.mxu0 %v2150_v18  ;;  %371 = vmatpush.msra.mxu2 %v2186_v28  ;;  %v2204_v59 = vsub.f32 1.0, %v126_v48  ;;  %v319_v61 = vand.u32 4294901760, %v2186_v28  ;;  %v2209_v62 = vsub.f32 %v2007_v42, %v2191_v52  ;;  %v2013_v4 = vpop.eup %2012 }
  0x9e   :  { %1973 = vmatpush.msra.mxu3 %v2186_v28  ;;  %v2233_v8 = vand.u32 4294901760, %v2011_v56  ;;  %v2250_v30 = vsub.f32 %v2009_v51, %v2225_v3  ;;  %v2256_v33 = vand.u32 4294901760, %v2013_v4  ;;  %v2261_v39 = vand.u32 4294901760, %v272_v9 }
  0x9f   :  { %v2212_v63 = vmul.f32 %v134_v60, %v2204_v59  ;;  %260 = vmatpush.msra.mxu0 %v2191_v52  ;;  %374 = vmatpush.msra.mxu2 %v2171_v34  ;;  %v320_v1 = vsub.f32 %v2186_v28, %v319_v61  ;;  %v331_v7 = vand.u32 4294901760, %v2209_v62  ;;  %v2263_v42 = vand.u32 4294901760, %v238_v29 }
  0xa0   :  { %1974 = vmatpush.msra.mxu3 %v2171_v34  ;;  %266 = vmatmul.f32.vlgmr.msra.gmra.mxu0 %v2178_v44  ;;  %v2254_v32 = vsub.f32 %v2011_v56, %v2233_v8  ;;  %v610_v48 = vand.u32 4294901760, %v2250_v30  ;;  %v152_v22 = vmul.f32 %v2182_v46, %v2090_v20  ;;  %v2274_v51 = vsub.f32 %v2013_v4, %v2256_v33 }
  0xa1   :  { %316 = vmatpush.msrb.mxu0 %v315_v43  ;;  %377 = vmatpush.msra.mxu2 %v2209_v62  ;;  %v321_v16 = vand.u32 4294901760, %v320_v1  ;;  %v332_v19 = vsub.f32 %v2209_v62, %v331_v7  ;;  %v604_v43 = vand.u32 4294901760, %v2239_v15  ;;  %v2278_v56 = vand.u32 4294901760, %v153_v38 }
  0xa2   :  { %1975 = vmatpush.msra.mxu3 %v2209_v62  ;;  %380 = vmatmul.f32.vlgmr.msra.gmra.mxu2 %v2130_v58  ;;  %v616_v50 = vand.u32 4294901760, %v2254_v32  ;;  %v2282_v60 = vsub.f32 %v238_v29, %v2263_v42  ;;  %v2298_v1 = vand.u32 4294901760, %v152_v22  ;;  %v150_v2 = vmul.f32 %v2204_v59, %v2086_v17 }
  0xa3   :  { %390 = vmatmul.f32.vlgmr.msra.gmra.mxu3 %v2217_v0  ;;  %505 = vmatpush.msrb.mxu2 %v2047_v21  ;;  %v333_v47 = vand.u32 4294901760, %v332_v19  ;;  %v605_v20 = vsub.f32 %v2239_v15, %v604_v43  ;;  %v2314_v17 = vsub.f32 %v153_v38, %v2278_v56 }
  0xa4   :  { %411 = vmatpush.msrb.mxu3 %v2047_v21  ;;  %322 = vmatpush.msrb.mxu0 %v321_v16  ;;  %v617_v13 = vsub.f32 %v2254_v32, %v616_v50  ;;  %v2322_v28 = vsub.f32 %v152_v22, %v2298_v1  ;;  %v2343_v34 = vand.u32 4294901760, %v2282_v60 }
  0xa5   :  { %1969 = vmatpush.msra.mxu1 %v321_v16  ;;  %507 = vmatpush.msrb.mxu2 %v2137_v5  ;;  %v895_v29 = vand.u32 4294901760, %v2314_v17 }
  0xa6   :  { %413 = vmatpush.msrb.mxu3 %v2137_v5  ;;  %328 = vmatpush.msrb.mxu0 %v327_v31  ;;  %v151_v5 = vmul.f32 %v2109_v36, %v2076_v11  ;;  %v611_v11 = vsub.f32 %v2250_v30, %v610_v48  ;;  %v288_v22 = vsub.f32 %v2282_v60, %v2343_v34 }
  0xa7   :  { %1970 = vmatpush.msra.mxu1 %v327_v31  ;;  %509 = vmatpush.msrb.mxu2 %v2176_v41  ;;  %v896_v62 = vsub.f32 %v2314_v17, %v895_v29 }
  0xa8   :  { %415 = vmatpush.msrb.mxu3 %v2176_v41  ;;  %334 = vmatpush.msrb.mxu0 %v333_v47  ;;  %v2288_v41 = vand.u32 4294901760, %v2217_v0  ;;  %v2316_v6 = vand.u32 4294901760, %v151_v5  ;;  %v612_v9 = vand.u32 4294901760, %v611_v11  ;;  %v1766_v11 = vld [vmem:[%s2782_s1 + $0x68] sm:$0xff] }
  0xa9   :  { %1971 = vmatpush.msra.mxu1 %v333_v47  ;;  %274 = vmatmul.f32.gmra.mxu0 %v2261_v39 }
  0xaa   :  { %340 = vmatmul.f32.vlgmr.msra.gmra.mxu1 %v2155_v23  ;;  %417 = vmatpush.msrb.mxu3 %v2150_v18  ;;  %v280_v4 = vsub.f32 %v2217_v0, %v2288_v41  ;;  %v2337_v31 = vsub.f32 %v151_v5, %v2316_v6 }
  0xab   :  { %463 = vmatpush.msrb.mxu1 %v313_v25  ;;  %511 = vmatpush.msrb.mxu2 %v2150_v18  ;;  %v622_v25 = vand.u32 4294901760, %v2274_v51  ;;  %v606_v18 = vand.u32 4294901760, %v605_v20 }
  0xac   :  { %543 = vmatpush.msra.mxu0 %v2047_v21  ;;  %385 = vmatmul.f32.gmra.mxu2 %v2174_v35  ;;  %v2333_v19 = vand.u32 4294901760, %v280_v4 }
  0xad   :  { %395 = vmatmul.f32.gmra.mxu3 %v2282_v60  ;;  %467 = vmatpush.msrb.mxu1 %v319_v61  ;;  %v2324_v61 = vand.u32 4294901760, %v150_v2  ;;  %v623_v16 = vsub.f32 %v2274_v51, %v622_v25 }
  0xae   :  { %419 = vmatpush.msrb.mxu3 %v2191_v52  ;;  %513 = vmatpush.msrb.mxu2 %v2191_v52  ;;  %v618_v52 = vand.u32 4294901760, %v617_v13 }
  0xaf   :  { %545 = vmatpush.msra.mxu0 %v2197_v55  ;;  %471 = vmatpush.msrb.mxu1 %v325_v53  ;;  %v901_v53 = vand.u32 4294901760, %v2322_v28  ;;  %v2348_v38 = vsub.f32 %v150_v2, %v2324_v61  ;;  %v624_v47 = vand.u32 4294901760, %v623_v16  ;;  %v897_v2 = vand.u32 4294901760, %v896_v62 }
  0xb0   :  { %607 = vmatpush.msra.mxu3 %v606_v18  ;;  %702 = vmatpush.msra.mxu2 %v2047_v21  ;;  %v2378_v18 = vand.u32 4294901760, %v288_v22 }
  0xb1   :  { %547 = vmatpush.msra.mxu0 %v2225_v3  ;;  %475 = vmatpush.msrb.mxu1 %v331_v7  ;;  %v907_v7 = vand.u32 4294901760, %v2337_v31  ;;  %v902_v5 = vsub.f32 %v2322_v28, %v901_v53  ;;  %v913_v20 = vand.u32 4294901760, %v2348_v38 }
  0xb2   :  { %613 = vmatpush.msra.mxu3 %v612_v9  ;;  %704 = vmatpush.msra.mxu2 %v2197_v55  ;;  %v1765_v9 = vld [vmem:[%s2782_s1 + $0x60] sm:$0xff] }
  0xb3   :  { %549 = vmatpush.msra.mxu0 %v2233_v8  ;;  %659 = vmatpush.msra.mxu1 %v2239_v15  ;;  %v908_v13 = vsub.f32 %v2337_v31, %v907_v7  ;;  %v903_v4 = vand.u32 4294901760, %v902_v5  ;;  %v160_v15 = vmul.f32 %v2182_v46, %v2097_v27  ;;  %v158_v27 = vmul.f32 %v2204_v59, %v2111_v37 }
  0xb4   :  { %619 = vmatpush.msra.mxu3 %v618_v52  ;;  %706 = vmatpush.msra.mxu2 %v2225_v3  ;;  %v1763_v52 = vld [vmem:[%s2782_s1 + $0x50] sm:$0xff] }
  0xb5   :  { %282 = vmatmul.f32.gmra.mxu0 %v2333_v19  ;;  %344 = vmatmul.f32.gmra.mxu1 %v2180_v45  ;;  %v909_v16 = vand.u32 4294901760, %v908_v13 }
  0xb6   :  { %551 = vmatpush.msra.mxu0 %v2256_v33  ;;  %625 = vmatpush.msra.mxu3 %v624_v47 }
  0xb7   :  { %662 = vmatpush.msra.mxu1 %v2250_v30  ;;  %708 = vmatpush.msra.mxu2 %v2233_v8 }
  0xb8   :  { %423 = vmatmul.f32.vlgmr.msrb.gmra.mxu3 %v2141_v10  ;;  %515 = vmatmul.f32.vlgmr.msrb.gmra.mxu2 %v2123_v49 }
  0xb9   :  { %796 = vmatpush.msrb.mxu3 %v2047_v21  ;;  %665 = vmatpush.msra.mxu1 %v2254_v32  ;;  %v914_v21 = vsub.f32 %v2348_v38, %v913_v20  ;;  %v159_v32 = vmul.f32 %v2109_v36, %v2078_v12  ;;  %v2470_v12 = vand.u32 4294901760, %v158_v27 }
  0xba   :  { %710 = vmatpush.msra.mxu2 %v2256_v33  ;;  %1810 = vperm.xlu1 %1995, %v1766_v11  }
  0xbb   :  { %798 = vmatpush.msrb.mxu3 %v2197_v55  ;;  %668 = vmatpush.msra.mxu1 %v2274_v51  ;;  %v915_v55 = vand.u32 4294901760, %v914_v21  ;;  %v2466_v46 = vand.u32 4294901760, %v159_v32 }
  0xbc   :  { %898 = vmatpush.msrb.mxu2 %v897_v2  ;;  %1805 = vperm.xlu2 %1996, %v1765_v9  }
  0xbd   :  { %800 = vmatpush.msrb.mxu3 %v2225_v3  ;;  %290 = vmatmul.f32.gmra.mxu0 %v2378_v18  ;;  %v1767_v3 = vld [vmem:[%s2782_s1 + $0x70] sm:$0xff]  ;;  %v2480_v59 = vsub.f32 %v159_v32, %v2466_v46 }
  0xbe   :  { %904 = vmatpush.msrb.mxu2 %v903_v4  ;;  %348 = vmatmul.f32.gmra.mxu1 %v2263_v42 }
  0xbf   :  { %802 = vmatpush.msrb.mxu3 %v2233_v8  ;;  %1795 = vperm.xlu0 %1997, %v1763_v52   ;;  %v161_v8 = vmul.f32 %v2147_v14, %v2095_v26  ;;  %v2457_v26 = vand.u32 4294901760, %v160_v15 }
  0xc0   :  { %910 = vmatpush.msrb.mxu2 %v909_v16  ;;  %429 = vmatmul.f32.gmra.mxu3 %v2195_v54 }
  0xc1   :  { %519 = vmatmul.f32.gmra.mxu2 %v2155_v23  ;;  %804 = vmatpush.msrb.mxu3 %v2256_v33  ;;  %v2449_v30 = vand.u32 4294901760, %v161_v8  ;;  %v2473_v36 = vsub.f32 %v160_v15, %v2457_v26 }
  0xc2   :  { %916 = vmatpush.msrb.mxu2 %v915_v55 }
  0xc3   :  { %v2464_v14 = vsub.f32 %v161_v8, %v2449_v30  ;;  %v1192_v33 = vand.u32 4294901760, %v2473_v36 }
  0xc4   :  { %1815 = vperm.xlu2 %1996, %v1767_v3  }
  0xc5   :  { %336 = vmatmul.f32.vlgmr.msrb.gmra.mxu0 %v2123_v49  ;;  %v1186_v37 = vand.u32 4294901760, %v2464_v14  ;;  %v1193_v51 = vsub.f32 %v2473_v36, %v1192_v33 }
  0xc6   :  { %477 = vmatmul.f32.vlgmr.msrb.gmra.mxu1 %v2123_v49  ;;  %754 = vmatpush.msrb.mxu0 %v604_v43  ;;  %v2487_v43 = vsub.f32 %v158_v27, %v2470_v12 }
  0xc7   :  { %836 = vmatpush.msrb.mxu1 %v2278_v56 }
  0xc8   :  { %435 = vmatmul.f32.gmra.mxu3 %v2288_v41  ;;  %758 = vmatpush.msrb.mxu0 %v610_v48  ;;  %v1187_v48 = vsub.f32 %v2464_v14, %v1186_v37 }
  0xc9   :  { %523 = vmatmul.f32.gmra.mxu2 %v2180_v45  ;;  %838 = vmatpush.msrb.mxu1 %v2298_v1 }
  0xca   :  { %762 = vmatpush.msrb.mxu0 %v616_v50  ;;  %v1198_v50 = vand.u32 4294901760, %v2480_v59 }
  0xcb   :  { %840 = vmatpush.msrb.mxu1 %v2316_v6 }
  0xcc   :  { %766 = vmatpush.msrb.mxu0 %v622_v25  ;;  %v1199_v25 = vsub.f32 %v2480_v59, %v1198_v50 }
  0xcd   :  { %842 = vmatpush.msrb.mxu1 %v2324_v61  ;;  %557 = vmatmul.f32.vlgmr.msra.gmra.mxu0 %v2178_v44 }
  0xce   :  { %481 = vmatmul.f32.gmra.mxu1 %v2155_v23  ;;  %950 = vmatpush.msra.mxu0 %v2314_v17  ;;  %v1194_v17 = vand.u32 4294901760, %v1193_v51 }
  0xd0   :  { %441 = vmatmul.f32.gmra.mxu3 %v2343_v34  ;;  %953 = vmatpush.msra.mxu0 %v2322_v28  ;;  %v188_v28 = vpop.permute.xlu1 %187 }
  0xd1   :  { %527 = vmatmul.f32.gmra.mxu2 %v2263_v42 }
  0xd2   :  { %956 = vmatpush.msra.mxu0 %v2337_v31 }
  0xd4   :  { %959 = vmatpush.msra.mxu0 %v2348_v38 }
  0xd5   :  { %565 = vmatmul.f32.gmra.mxu0 %v2261_v39 }
  0xd6   :  { %485 = vmatmul.f32.gmra.mxu1 %v2180_v45 }
  0xd8   :  { %627 = vmatmul.f32.vlgmr.msra.gmra.mxu3 %v2123_v49  ;;  %v178_v38 = vpop.permute.xlu1 %177 }
  0xd9   :  { %714 = vmatmul.f32.vlgmr.msra.gmra.mxu2 %v2141_v10  ;;  %995 = vmatpush.msra.mxu3 %v2278_v56  ;;  %v191_v22 = vmul.f32 %v178_v38, %v2114_v40 }
  0xda   :  { %1089 = vmatpush.msra.mxu2 %v2278_v56  ;;  %v1204_v56 = vand.u32 4294901760, %v2487_v43 }
  0xdb   :  { %997 = vmatpush.msra.mxu3 %v2298_v1 }
  0xdc   :  { %1091 = vmatpush.msra.mxu2 %v2298_v1  ;;  %v1188_v1 = vand.u32 4294901760, %v1187_v48 }
  0xdd   :  { %999 = vmatpush.msra.mxu3 %v2316_v6  ;;  %573 = vmatmul.f32.gmra.mxu0 %v2333_v19 }
  0xde   :  { %1093 = vmatpush.msra.mxu2 %v2316_v6  ;;  %489 = vmatmul.f32.gmra.mxu1 %v2263_v42  ;;  %v1205_v6 = vsub.f32 %v2487_v43, %v1204_v56 }
  0xdf   :  { %1001 = vmatpush.msra.mxu3 %v2324_v61 }
  0xe0   :  { %1095 = vmatpush.msra.mxu2 %v2324_v61  ;;  %631 = vmatmul.f32.gmra.mxu3 %v2155_v23  ;;  %v1200_v61 = vand.u32 4294901760, %v1199_v25  ;;  %v1206_v31 = vand.u32 4294901760, %v1205_v6 }
  0xe1   :  { %720 = vmatmul.f32.gmra.mxu2 %v2195_v54 }
  0xe5   :  { %581 = vmatmul.f32.gmra.mxu0 %v2378_v18 }
  0xe6   :  { %671 = vmatmul.f32.vlgmr.msra.gmra.mxu1 %v2130_v58 }
  0xe7   :  { %1045 = vmatpush.msra.mxu1 %v895_v29  ;;  %v183_v29 = vpop.permute.xlu2 %182 }
  0xe8   :  { %635 = vmatmul.f32.gmra.mxu3 %v2180_v45  ;;  %v192_v47 = vmul.f32 %v183_v29, %v2200_v57 }
  0xe9   :  { %726 = vmatmul.f32.gmra.mxu2 %v2288_v41  ;;  %1049 = vmatpush.msra.mxu1 %v901_v53  ;;  %v193_v53 = vmul.f32 %v188_v28, %v2160_v24 }
  0xea   :  { %v2519_v5 = vand.u32 4294901760, %v192_v47 }
  0xeb   :  { %1053 = vmatpush.msra.mxu1 %v907_v7  ;;  %v2513_v7 = vand.u32 4294901760, %v193_v53 }
  0xec   :  { %v2530_v40 = vsub.f32 %v192_v47, %v2519_v5 }
  0xed   :  { %1057 = vmatpush.msra.mxu1 %v913_v20  ;;  %768 = vmatmul.f32.vlgmr.msrb.gmra.mxu0 %v2123_v49  ;;  %v2524_v57 = vsub.f32 %v193_v53, %v2513_v7  ;;  %v2526_v20 = vand.u32 4294901760, %v191_v22 }
  0xee   :  { %676 = vmatmul.f32.gmra.mxu1 %v2174_v35  ;;  %1127 = vmatpush.msrb.mxu0 %v2449_v30  ;;  %v1483_v4 = vand.u32 4294901760, %v2530_v40 }
  0xef   :  { %v173_v62 = vpop.permute.xlu2 %172  ;;  %v2539_v2 = vsub.f32 %v191_v22, %v2526_v20 }
  0xf0   :  { %639 = vmatmul.f32.gmra.mxu3 %v2263_v42  ;;  %1129 = vmatpush.msrb.mxu0 %v2457_v26  ;;  %v190_v24 = vmul.f32 %v173_v62, %v2212_v63  ;;  %v1477_v63 = vand.u32 4294901760, %v2524_v57  ;;  %v1484_v16 = vsub.f32 %v2530_v40, %v1483_v4 }
  0xf1   :  { %732 = vmatmul.f32.gmra.mxu2 %v2343_v34  ;;  %v1489_v9 = vand.u32 4294901760, %v2539_v2 }
  0xf2   :  { %1131 = vmatpush.msrb.mxu0 %v2466_v46  ;;  %v2532_v11 = vand.u32 4294901760, %v190_v24  ;;  %v1478_v21 = vsub.f32 %v2524_v57, %v1477_v63  ;;  %v1485_v8 = vand.u32 4294901760, %v1484_v16 }
  0xf3   :  { %v1490_v3 = vsub.f32 %v2539_v2, %v1489_v9 }
  0xf4   :  { %1133 = vmatpush.msrb.mxu0 %v2470_v12  ;;  %v2544_v13 = vsub.f32 %v190_v24, %v2532_v11  ;;  %v1479_v52 = vand.u32 4294901760, %v1478_v21 }
  0xf5   :  { %772 = vmatmul.f32.gmra.mxu0 %v2155_v23  ;;  %v1491_v32 = vand.u32 4294901760, %v1490_v3 }
  0xf6   :  { %681 = vmatmul.f32.gmra.mxu1 %v2217_v0  ;;  %v1495_v55 = vand.u32 4294901760, %v2544_v13 }
  0xf8   :  { %806 = vmatmul.f32.vlgmr.msrb.gmra.mxu3 %v2123_v49  ;;  %v1496_v15 = vsub.f32 %v2544_v13, %v1495_v55 }
  0xf9   :  { %918 = vmatmul.f32.vlgmr.msrb.gmra.mxu2 %v2123_v49  ;;  %1189 = vmatpush.msrb.mxu3 %v1188_v1 }
  0xfa   :  { %1286 = vmatpush.msrb.mxu2 %v2449_v30  ;;  %v1497_v27 = vand.u32 4294901760, %v1496_v15 }
  0xfb   :  { %1195 = vmatpush.msrb.mxu3 %v1194_v17 }
  0xfc   :  { %1288 = vmatpush.msrb.mxu2 %v2457_v26 }
  0xfd   :  { %1201 = vmatpush.msrb.mxu3 %v1200_v61  ;;  %776 = vmatmul.f32.gmra.mxu0 %v2180_v45 }
  0xfe   :  { %1290 = vmatpush.msrb.mxu2 %v2466_v46  ;;  %686 = vmatmul.f32.gmra.mxu1 %v2282_v60 }
  0xff   :  { %1207 = vmatpush.msrb.mxu3 %v1206_v31 }
 0x100   :  { %1292 = vmatpush.msrb.mxu2 %v2470_v12  ;;  %810 = vmatmul.f32.gmra.mxu3 %v2155_v23 }
 0x101   :  { %922 = vmatmul.f32.gmra.mxu2 %v2155_v23 }
 0x105   :  { %780 = vmatmul.f32.gmra.mxu0 %v2263_v42 }
 0x106   :  { %848 = vmatmul.f32.vlgmr.msrb.gmra.mxu1 %v2178_v44 }
 0x107   :  { %1241 = vmatpush.msrb.mxu1 %v2464_v14 }
 0x108   :  { %814 = vmatmul.f32.gmra.mxu3 %v2180_v45 }
 0x109   :  { %926 = vmatmul.f32.gmra.mxu2 %v2180_v45  ;;  %1244 = vmatpush.msrb.mxu1 %v2473_v36 }
 0x10b   :  { %1247 = vmatpush.msrb.mxu1 %v2480_v59 }
 0x10d   :  { %1250 = vmatpush.msrb.mxu1 %v2487_v43  ;;  %962 = vmatmul.f32.vlgmr.msra.gmra.mxu0 %v2130_v58 }
 0x10e   :  { %856 = vmatmul.f32.gmra.mxu1 %v2261_v39  ;;  %1336 = vmatpush.msra.mxu0 %v1186_v37 }
 0x110   :  { %818 = vmatmul.f32.gmra.mxu3 %v2263_v42  ;;  %1340 = vmatpush.msra.mxu0 %v1192_v33 }
 0x111   :  { %930 = vmatmul.f32.gmra.mxu2 %v2263_v42 }
 0x112   :  { %1344 = vmatpush.msra.mxu0 %v1198_v50 }
 0x114   :  { %1348 = vmatpush.msra.mxu0 %v1204_v56 }
 0x115   :  { %967 = vmatmul.f32.gmra.mxu0 %v2174_v35 }
 0x116   :  { %864 = vmatmul.f32.gmra.mxu1 %v2333_v19 }
 0x118   :  { %1005 = vmatmul.f32.vlgmr.msra.gmra.mxu3 %v2141_v10 }
 0x119   :  { %1097 = vmatmul.f32.vlgmr.msra.gmra.mxu2 %v2123_v49  ;;  %1380 = vmatpush.msra.mxu3 %v2449_v30 }
 0x11a   :  { %1480 = vmatpush.msra.mxu2 %v1479_v52 }
 0x11b   :  { %1382 = vmatpush.msra.mxu3 %v2457_v26 }
 0x11c   :  { %1486 = vmatpush.msra.mxu2 %v1485_v8  ;;  %v2631_v8 = vpop.permute.xlu1 %1800 }
 0x11d   :  { %1384 = vmatpush.msra.mxu3 %v2466_v46  ;;  %972 = vmatmul.f32.gmra.mxu0 %v2217_v0  ;;  %v267_v14 = vpop.f32.mrf.mxu0 }
 0x11e   :  { %1492 = vmatpush.msra.mxu2 %v1491_v32  ;;  %872 = vmatmul.f32.gmra.mxu1 %v2378_v18 }
 0x11f   :  { %1386 = vmatpush.msra.mxu3 %v2470_v12 }
 0x120   :  { %1498 = vmatpush.msra.mxu2 %v1497_v27  ;;  %1011 = vmatmul.f32.gmra.mxu3 %v2195_v54 }
 0x121   :  { %1101 = vmatmul.f32.gmra.mxu2 %v2155_v23 }
 0x125   :  { %977 = vmatmul.f32.gmra.mxu0 %v2282_v60  ;;  %v381_v12 = vpop.f32.mrf.mxu2 }
 0x126   :  { %1059 = vmatmul.f32.vlgmr.msra.gmra.mxu1 %v2123_v49  ;;  %v391_v30 = vpop.f32.mrf.mxu3  ;;  %v275_v26 = vpop.f32.mrf.mxu0 }
 0x127   :  { %1418 = vmatpush.msra.mxu1 %v2513_v7  ;;  %v341_v46 = vpop.f32.mrf.mxu1 }
 0x128   :  { %1017 = vmatmul.f32.gmra.mxu3 %v2288_v41  ;;  %v342_v25 = vadd.f32 %v341_v46, %v275_v26 }
 0x129   :  { %1105 = vmatmul.f32.gmra.mxu2 %v2180_v45  ;;  %1420 = vmatpush.msra.mxu1 %v2519_v5 }
 0x12b   :  { %1422 = vmatpush.msra.mxu1 %v2526_v20 }
 0x12d   :  { %1424 = vmatpush.msra.mxu1 %v2532_v11  ;;  %1139 = vmatmul.f32.vlgmr.msrb.gmra.mxu0 %v2178_v44 }
 0x12e   :  { %1063 = vmatmul.f32.gmra.mxu1 %v2155_v23  ;;  %1532 = vmatpush.msrb.mxu0 %v2524_v57 }
 0x12f   :  { %v386_v33 = vpop.f32.mrf.mxu2 }
 0x130   :  { %1023 = vmatmul.f32.gmra.mxu3 %v2343_v34  ;;  %1535 = vmatpush.msrb.mxu0 %v2530_v40  ;;  %v396_v36 = vpop.f32.mrf.mxu3  ;;  %v387_v17 = vadd.f32 %v386_v33, %v342_v25  ;;  %v2643_v33 = vpop.permute.xlu2 %1805 }
 0x131   :  { %1109 = vmatmul.f32.gmra.mxu2 %v2263_v42  ;;  %v2623_v40 = vpop.permute.xlu0 %1795 }
 0x132   :  { %v283_v37 = vpop.f32.mrf.mxu0  ;;  %v345_v59 = vpop.f32.mrf.mxu1  ;;  %1538 = vmatpush.msrb.mxu0 %v2539_v2 }
 0x133   :  { %v346_v47 = vadd.f32 %v345_v59, %v283_v37 }
 0x134   :  { %1541 = vmatpush.msrb.mxu0 %v2544_v13 }
 0x135   :  { %1147 = vmatmul.f32.gmra.mxu0 %v2261_v39  ;;  %v392_v22 = vadd.f32 %v391_v30, %v346_v47 }
 0x136   :  { %1067 = vmatmul.f32.gmra.mxu1 %v2180_v45 }
 0x138   :  { %1209 = vmatmul.f32.vlgmr.msrb.gmra.mxu3 %v2123_v49 }
 0x139   :  { %1296 = vmatmul.f32.vlgmr.msrb.gmra.mxu2 %v2141_v10  ;;  %1577 = vmatpush.msrb.mxu3 %v2513_v7 }
 0x13a   :  { %1671 = vmatpush.msrb.mxu2 %v2513_v7  ;;  %v291_v43 = vpop.f32.mrf.mxu0 }
 0x13b   :  { %1579 = vmatpush.msrb.mxu3 %v2519_v5  ;;  %v349_v48 = vpop.f32.mrf.mxu1  ;;  %v424_v51 = vpop.f32.mrf.mxu3 }
 0x13c   :  { %1673 = vmatpush.msrb.mxu2 %v2519_v5  ;;  %v350_v50 = vadd.f32 %v349_v48, %v291_v43  ;;  %v516_v56 = vpop.f32.mrf.mxu2 }
 0x13d   :  { %1581 = vmatpush.msrb.mxu3 %v2526_v20  ;;  %1155 = vmatmul.f32.gmra.mxu0 %v2333_v19 }
 0x13e   :  { %1675 = vmatpush.msrb.mxu2 %v2526_v20  ;;  %1071 = vmatmul.f32.gmra.mxu1 %v2263_v42  ;;  %v397_v1 = vadd.f32 %v396_v36, %v350_v50 }
 0x13f   :  { %1583 = vmatpush.msrb.mxu3 %v2532_v11 }
 0x140   :  { %1677 = vmatpush.msrb.mxu2 %v2532_v11  ;;  %1213 = vmatmul.f32.gmra.mxu3 %v2155_v23 }
 0x141   :  { %1302 = vmatmul.f32.gmra.mxu2 %v2195_v54 }
 0x142   :  { %v337_v6 = vpop.f32.mrf.mxu0 }
 0x143   :  { %v478_v28 = vpop.f32.mrf.mxu1  ;;  %v338_v61 = vadd.f32 %v337_v6, %v267_v14  ;;  %v430_v29 = vpop.f32.mrf.mxu3 }
 0x144   :  { %v520_v31 = vpop.f32.mrf.mxu2  ;;  %v431_v53 = vadd.f32 %v430_v29, %v387_v17  ;;  %v2653_v6 = vpop.permute.xlu1 %1810 }
 0x145   :  { %v382_v38 = vadd.f32 %v381_v12, %v338_v61  ;;  %1163 = vmatmul.f32.gmra.mxu0 %v2378_v18 }
 0x146   :  { %1253 = vmatmul.f32.vlgmr.msrb.gmra.mxu1 %v2130_v58 }
 0x147   :  { %1627 = vmatpush.msrb.mxu1 %v1477_v63  ;;  %v425_v62 = vadd.f32 %v424_v51, %v382_v38 }
 0x148   :  { %1217 = vmatmul.f32.gmra.mxu3 %v2180_v45 }
 0x149   :  { %1308 = vmatmul.f32.gmra.mxu2 %v2288_v41  ;;  %1631 = vmatpush.msrb.mxu1 %v1483_v4  ;;  %v479_v7 = vadd.f32 %v478_v28, %v425_v62 }
 0x14a   :  { %v2615_v24 = vpop.f32.mrf.mxu0 }
 0x14b   :  { %1635 = vmatpush.msrb.mxu1 %v1489_v9  ;;  %v482_v5 = vpop.f32.mrf.mxu1  ;;  %v517_v20 = vadd.f32 %v516_v56, %v479_v7  ;;  %v436_v11 = vpop.f32.mrf.mxu3 }
 0x14c   :  { %v483_v57 = vadd.f32 %v482_v5, %v431_v53  ;;  %v524_v63 = vpop.f32.mrf.mxu2  ;;  %v437_v21 = vadd.f32 %v436_v11, %v392_v22 }
 0x14d   :  { %1639 = vmatpush.msrb.mxu1 %v1495_v55  ;;  %2014 = vtanh.f32 %v517_v20  ;;  %1350 = vmatmul.f32.vlgmr.msra.gmra.mxu0 %v2123_v49 }
 0x14e   :  { %v521_v16 = vadd.f32 %v520_v31, %v483_v57  ;;  %1258 = vmatmul.f32.gmra.mxu1 %v2174_v35 }
 0x150   :  { %2016 = vtanh.f32 %v521_v16  ;;  %1221 = vmatmul.f32.gmra.mxu3 %v2263_v42 }
 0x151   :  { %1314 = vmatmul.f32.gmra.mxu2 %v2343_v34 }
 0x152   :  { %v2625_v4 = vpop.f32.mrf.mxu0 }
 0x153   :  { %v486_v2 = vpop.f32.mrf.mxu1  ;;  %v2627_v9 = vpop.eup %2014 }
 0x154   :  { %v442_v13 = vpop.f32.mrf.mxu3  ;;  %v487_v55 = vadd.f32 %v486_v2, %v437_v21  ;;  %v528_v52 = vpop.f32.mrf.mxu2  ;;  %v1818_v32 = vmul.f32 %v2627_v9, %v2623_v40 }
 0x155   :  { %1354 = vmatmul.f32.gmra.mxu0 %v2155_v23  ;;  %v443_v30 = vadd.f32 %v442_v13, %v397_v1 }
 0x156   :  { %v2629_v3 = vpop.eup %2016  ;;  %v525_v15 = vadd.f32 %v524_v63, %v487_v55  ;;  %1263 = vmatmul.f32.gmra.mxu1 %v2217_v0 }
 0x157   :  { %v1823_v27 = vmul.f32 %v2629_v3, %v2631_v8 }
 0x158   :  { %2018 = vtanh.f32 %v525_v15  ;;  %1388 = vmatmul.f32.vlgmr.msra.gmra.mxu3 %v2123_v49 }
 0x159   :  { %1500 = vmatmul.f32.vlgmr.msra.gmra.mxu2 %v2123_v49  ;;  %v1843_v14 = vadd.f32 %v1823_v27, %v1818_v32 }
 0x15a   :  { %v574_v46 = vpop.f32.mrf.mxu0 }
 0x15b   :  { %v490_v26 = vpop.f32.mrf.mxu1 }
 0x15c   :  { %v491_v12 = vadd.f32 %v490_v26, %v443_v30  ;;  %v628_v36 = vpop.f32.mrf.mxu3  ;;  %v715_v37 = vpop.f32.mrf.mxu2 }
 0x15d   :  { %1358 = vmatmul.f32.gmra.mxu0 %v2180_v45 }
 0x15e   :  { %v2641_v59 = vpop.eup %2018  ;;  %v529_v43 = vadd.f32 %v528_v52, %v491_v12  ;;  %1268 = vmatmul.f32.gmra.mxu1 %v2282_v60 }
 0x15f   :  { %v1828_v48 = vmul.f32 %v2641_v59, %v2643_v33 }
 0x160   :  { %2020 = vtanh.f32 %v529_v43  ;;  %1392 = vmatmul.f32.gmra.mxu3 %v2155_v23 }
 0x161   :  { %1504 = vmatmul.f32.gmra.mxu2 %v2155_v23  ;;  %v1844_v50 = vadd.f32 %v1843_v14, %v1828_v48 }
 0x162   :  { %v582_v51 = vpop.f32.mrf.mxu0 }
 0x163   :  { %v672_v56 = vpop.f32.mrf.mxu1 }
 0x164   :  { %v632_v1 = vpop.f32.mrf.mxu3  ;;  %v721_v25 = vpop.f32.mrf.mxu2 }
 0x165   :  { %1362 = vmatmul.f32.gmra.mxu0 %v2263_v42 }
 0x166   :  { %v2651_v17 = vpop.eup %2020  ;;  %1430 = vmatmul.f32.vlgmr.msra.gmra.mxu1 %v2178_v44 }
 0x167   :  { %v1833_v28 = vmul.f32 %v2651_v17, %v2653_v6 }
 0x168   :  { %1396 = vmatmul.f32.gmra.mxu3 %v2180_v45 }
 0x169   :  { %1508 = vmatmul.f32.gmra.mxu2 %v2180_v45  ;;  %v2661_v61 = vadd.f32 %v1844_v50, %v1833_v28 }
 0x16a   :  { %v769_v31 = vpop.f32.mrf.mxu0 }
 0x16b   :  { %v677_v29 = vpop.f32.mrf.mxu1 }
 0x16c   :  { %v636_v53 = vpop.f32.mrf.mxu3  ;;  %v727_v38 = vpop.f32.mrf.mxu2 }
 0x16d   :  { %1544 = vmatmul.f32.vlgmr.msrb.gmra.mxu0 %v2130_v58  ;;  %v637_v20 = vadd.f32 %v636_v53, %v574_v46 }
 0x16e   :  { %1438 = vmatmul.f32.gmra.mxu1 %v2261_v39 }
 0x170   :  { %1400 = vmatmul.f32.gmra.mxu3 %v2263_v42 }
 0x171   :  { %1512 = vmatmul.f32.gmra.mxu2 %v2263_v42 }
 0x172   :  { %v773_v47 = vpop.f32.mrf.mxu0 }
 0x173   :  { %v682_v44 = vpop.f32.mrf.mxu1 }
 0x174   :  { %v640_v62 = vpop.f32.mrf.mxu3  ;;  %v733_v7 = vpop.f32.mrf.mxu2  ;;  %v683_v13 = vadd.f32 %v682_v44, %v637_v20 }
 0x175   :  { %1549 = vmatmul.f32.gmra.mxu0 %v2174_v35  ;;  %v629_v35 = vadd.f32 %v628_v36, %v2615_v24  ;;  %v641_v55 = vadd.f32 %v640_v62, %v582_v51  ;;  %v2684_v36 = vpop.permute.xlu2 %1815 }
 0x176   :  { %1446 = vmatmul.f32.gmra.mxu1 %v2333_v19  ;;  %v633_v19 = vadd.f32 %v632_v1, %v2625_v4 }
 0x177   :  { %v673_v63 = vadd.f32 %v672_v56, %v629_v35 }
 0x178   :  { %1587 = vmatmul.f32.vlgmr.msrb.gmra.mxu3 %v2141_v10  ;;  %v678_v10 = vadd.f32 %v677_v29, %v633_v19 }
 0x179   :  { %1679 = vmatmul.f32.vlgmr.msrb.gmra.mxu2 %v2123_v49 }
 0x17a   :  { %v777_v39 = vpop.f32.mrf.mxu0 }
 0x17b   :  { %v687_v22 = vpop.f32.mrf.mxu1 }
 0x17c   :  { %v807_v5 = vpop.f32.mrf.mxu3  ;;  %v919_v58 = vpop.f32.mrf.mxu2 }
 0x17d   :  { %1554 = vmatmul.f32.gmra.mxu0 %v2217_v0  ;;  %v716_v0 = vadd.f32 %v715_v37, %v673_v63 }
 0x17e   :  { %1454 = vmatmul.f32.gmra.mxu1 %v2378_v18  ;;  %v728_v18 = vadd.f32 %v727_v38, %v683_v13  ;;  %v1711_v13 = vmul.f32 -2.0, %v2627_v9 }
 0x17f   :  { %v770_v4 = vadd.f32 %v769_v31, %v716_v0 }
 0x180   :  { %1593 = vmatmul.f32.gmra.mxu3 %v2195_v54  ;;  %v722_v54 = vadd.f32 %v721_v25, %v678_v10  ;;  %v778_v52 = vadd.f32 %v777_v39, %v728_v18  ;;  %v1703_v10 = vmul.f32 %v2627_v9, %v2627_v9  ;;  %v1966_v9 = vld [vmem:[%s2781_s0 + $0x2] ss:$8 sm:$0x3] }
 0x181   :  { %1683 = vmatmul.f32.gmra.mxu2 %v2155_v23  ;;  %v808_v14 = vadd.f32 %v807_v5, %v770_v4 }
 0x182   :  { %v781_v11 = vpop.f32.mrf.mxu0  ;;  %v774_v24 = vadd.f32 %v773_v47, %v722_v54 }
 0x183   :  { %v849_v57 = vpop.f32.mrf.mxu1 }
 0x184   :  { %v811_v21 = vpop.f32.mrf.mxu3  ;;  %v920_v16 = vadd.f32 %v919_v58, %v849_v57  ;;  %v923_v2 = vpop.f32.mrf.mxu2 }
 0x185   :  { %1559 = vmatmul.f32.gmra.mxu0 %v2282_v60  ;;  %v812_v15 = vadd.f32 %v811_v21, %v774_v24  ;;  %v2697_v21 = vsub.f32 1.0, %v1703_v10 }
 0x186   :  { %1641 = vmatmul.f32.vlgmr.msrb.gmra.mxu1 %v2123_v49  ;;  %v688_v49 = vadd.f32 %v687_v22, %v641_v55 }
 0x187   :  { %2022 = vtanh.f32 %v812_v15 }
 0x188   :  { %1599 = vmatmul.f32.gmra.mxu3 %v2288_v41  ;;  %2024 = vtanh.f32 %v808_v14  ;;  %v734_v41 = vadd.f32 %v733_v7, %v688_v49 }
 0x189   :  { %1687 = vmatmul.f32.gmra.mxu2 %v2180_v45 }
 0x18a   :  { %v963_v27 = vpop.f32.mrf.mxu0  ;;  %v782_v37 = vadd.f32 %v781_v11, %v734_v41 }
 0x18b   :  { %v857_v32 = vpop.f32.mrf.mxu1  ;;  %v964_v60 = vadd.f32 %v963_v27, %v920_v16  ;;  %v1704_v27 = vmul.f32 %v2629_v3, %v2629_v3 }
 0x18c   :  { %v815_v30 = vpop.f32.mrf.mxu3  ;;  %v924_v26 = vadd.f32 %v923_v2, %v857_v32  ;;  %v927_v46 = vpop.f32.mrf.mxu2  ;;  %v1715_v32 = vmul.f32 %v1711_v13, %v2697_v21 }
 0x18d   :  { %v816_v12 = vadd.f32 %v815_v30, %v778_v52  ;;  %v2023_v25 = vpop.eup %2022 }
 0x18e   :  { %1645 = vmatmul.f32.gmra.mxu1 %v2155_v23  ;;  %v1846_v23 = vadd.f32 %v2661_v61, %v2684_v36  ;;  %v2025_v29 = vpop.eup %2024  ;;  %v1824_v31 = vmul.f32 %v2023_v25, %v2631_v8  ;;  %v1904_v25 = vperm.slane %v1966_v9, 1 }
 0x18f   :  { %2026 = vtanh.f32 %v816_v12  ;;  %v1819_v38 = vmul.f32 %v2025_v29, %v2623_v40  ;;  %v2709_v12 = vsub.f32 1.0, %v1704_v27  ;;  %v1705_v29 = vmul.f32 %v2641_v59, %v2641_v59 }
 0x190   :  { %1605 = vmatmul.f32.gmra.mxu3 %v2343_v34  ;;  %v1847_v53 = vrot.slane %v1846_v23, 4 }
 0x191   :  { %1691 = vmatmul.f32.gmra.mxu2 %v2263_v42  ;;  %v1853_v7 = vadd.f32 %v1824_v31, %v1819_v38 }
 0x192   :  { %v968_v48 = vpop.f32.mrf.mxu0  ;;  %v1848_v58 = vadd.f32 %v1847_v53, %v1846_v23 }
 0x193   :  { %v865_v43 = vpop.f32.mrf.mxu1  ;;  %v969_v56 = vadd.f32 %v968_v48, %v924_v26  ;;  %v1903_v48 = vperm.slane %v1966_v9, 0  ;;  %v1714_v9 = vmul.f32 -2.0, %v2651_v17 }
 0x194   :  { %v819_v50 = vpop.f32.mrf.mxu3  ;;  %v928_v51 = vadd.f32 %v927_v46, %v865_v43  ;;  %v931_v1 = vpop.f32.mrf.mxu2  ;;  %v1849_v57 = vrot.slane %v1848_v58, 2 }
 0x195   :  { %v820_v28 = vadd.f32 %v819_v50, %v782_v37  ;;  %v2027_v34 = vpop.eup %2026  ;;  %v1712_v37 = vmul.f32 -2.0, %v2629_v3 }
 0x196   :  { %1649 = vmatmul.f32.gmra.mxu1 %v2180_v45  ;;  %v1829_v44 = vmul.f32 %v2027_v34, %v2643_v33  ;;  %v1850_v55 = vadd.f32 %v1849_v57, %v1848_v58  ;;  %v1713_v58 = vmul.f32 -2.0, %v2641_v59 }
 0x197   :  { %2028 = vtanh.f32 %v820_v28  ;;  %v1716_v31 = vmul.f32 %v1712_v37, %v2709_v12 }
 0x198   :  { %v1854_v45 = vadd.f32 %v1853_v7, %v1829_v44 }
 0x19a   :  { %v973_v62 = vpop.f32.mrf.mxu0 }
 0x19b   :  { %v873_v47 = vpop.f32.mrf.mxu1  ;;  %v974_v39 = vadd.f32 %v973_v62, %v928_v51  ;;  %v2719_v62 = vsub.f32 1.0, %v1705_v29 }
 0x19c   :  { %v932_v22 = vadd.f32 %v931_v1, %v873_v47  ;;  %v1006_v61 = vpop.f32.mrf.mxu3  ;;  %v1098_v5 = vpop.f32.mrf.mxu2 }
 0x19d   :  { %v2029_v19 = vpop.eup %2028  ;;  %v1007_v35 = vadd.f32 %v1006_v61, %v964_v60  ;;  %v1851_v60 = vrot.slane %v1850_v55, 1  ;;  %v1717_v13 = vmul.f32 %v1713_v58, %v2719_v62 }
 0x19e   :  { %v1834_v20 = vmul.f32 %v2029_v19, %v2653_v6  ;;  %1653 = vmatmul.f32.gmra.mxu1 %v2263_v42 }
 0x19f   :  { %v2712_v1 = vadd.f32 %v1851_v60, %v1850_v55 }
 0x1a0   :  { %v1855_v11 = vadd.f32 %v1854_v45, %v1834_v20 }
 0x1a1   :  { %v1907_v44 = vsub.f32 %v2712_v1, %v1903_v48 }
 0x1a2   :  { %v1856_v63 = vadd.f32 %v1855_v11, %v2684_v36  ;;  %v978_v16 = vpop.f32.mrf.mxu0  ;;  %v1967_v11 = vld [vmem:[%s2781_s0 + $0x3] ss:$8 sm:$0x3] }
 0x1a3   :  { %v1060_v2 = vpop.f32.mrf.mxu1  ;;  %v979_v0 = vadd.f32 %v978_v16, %v932_v22  ;;  %v1922_v57 = vmul.f32 %v1907_v44, %v1907_v44 }
 0x1a4   :  { %v1857_v54 = vrot.slane %v1856_v63, 4  ;;  %v1012_v18 = vpop.f32.mrf.mxu3  ;;  %v1061_v24 = vadd.f32 %v1060_v2, %v1007_v35  ;;  %v1102_v4 = vpop.f32.mrf.mxu2 }
 0x1a5   :  { %v1013_v42 = vadd.f32 %v1012_v18, %v969_v56 }
 0x1a6   :  { %v1858_v52 = vadd.f32 %v1857_v54, %v1856_v63  ;;  %v1099_v15 = vadd.f32 %v1098_v5, %v1061_v24  ;;  %v1706_v54 = vmul.f32 %v2651_v17, %v2651_v17 }
 0x1a8   :  { %v1859_v14 = vrot.slane %v1858_v52, 2  ;;  %v1727_v30 = vmul.f32 %v2697_v21, %v1099_v15  ;;  %v1743_v26 = vmul.f32 %v1715_v32, %v1099_v15  ;;  %v2737_v32 = vsub.f32 1.0, %v1706_v54 }
 0x1aa   :  { %v1860_v46 = vadd.f32 %v1859_v14, %v1858_v52  ;;  %v2707_v49 = vmul.f32 %v1743_v26, %v1099_v15  ;;  %v1140_v43 = vpop.f32.mrf.mxu0  ;;  %v1820_v7 = vmul.f32 %v2623_v40, %v1727_v30 }
 0x1ab   :  { %v1064_v41 = vpop.f32.mrf.mxu1 }
 0x1ac   :  { %v1018_v50 = vpop.f32.mrf.mxu3  ;;  %v1065_v51 = vadd.f32 %v1064_v41, %v1013_v42  ;;  %v1106_v56 = vpop.f32.mrf.mxu2  ;;  %v1861_v23 = vrot.slane %v1860_v46, 1 }
 0x1ad   :  { %v1019_v28 = vadd.f32 %v1018_v50, %v974_v39 }
 0x1ae   :  { %v1103_v34 = vadd.f32 %v1102_v4, %v1065_v51  ;;  %v1862_v53 = vadd.f32 %v1861_v23, %v1860_v46  ;;  %v1718_v51 = vmul.f32 %v1714_v9, %v2737_v32 }
 0x1b0   :  { %v1728_v38 = vmul.f32 %v2709_v12, %v1103_v34  ;;  %v1744_v3 = vmul.f32 %v1716_v31, %v1103_v34  ;;  %v1908_v47 = vsub.f32 %v1862_v53, %v1904_v25 }
 0x1b2   :  { %v2722_v22 = vmul.f32 %v1744_v3, %v1103_v34  ;;  %v1825_v39 = vmul.f32 %v2631_v8, %v1728_v38  ;;  %v1923_v61 = vmul.f32 %v1908_v47, %v1908_v47  ;;  %v1148_v19 = vpop.f32.mrf.mxu0 }
 0x1b3   :  { %v1068_v5 = vpop.f32.mrf.mxu1 }
 0x1b4   :  { %v1863_v35 = vadd.f32 %v1825_v39, %v1820_v7  ;;  %v1024_v45 = vpop.f32.mrf.mxu3  ;;  %v1069_v20 = vadd.f32 %v1068_v5, %v1019_v28  ;;  %v1110_v10 = vpop.f32.mrf.mxu2  ;;  %v1926_v63 = vrot.slane %v1923_v61, 7 }
 0x1b5   :  { %v1025_v16 = vadd.f32 %v1024_v45, %v979_v0 }
 0x1b6   :  { %v1107_v2 = vadd.f32 %v1106_v56, %v1069_v20  ;;  %v1927_v59 = vsel %vm1911_vm1, %v1922_v57, %v1926_v63 }
 0x1b7   :  { %v1929_v18 = vmul.f32 %v1967_v11, %v1927_v59 }
 0x1b8   :  { %v1729_v24 = vmul.f32 %v2719_v62, %v1107_v2  ;;  %v1745_v4 = vmul.f32 %v1717_v13, %v1107_v2 }
 0x1b9   :  { %v1931_v55 = vperm.slane %v1929_v18, 0  ;;  %v1932_v42 = vperm.slane %v1929_v18, 1 }
 0x1ba   :  { %v2734_v52 = vmul.f32 %v1745_v4, %v1107_v2  ;;  %v1830_v15 = vmul.f32 %v2643_v33, %v1729_v24  ;;  %v1156_v27 = vpop.f32.mrf.mxu0 }
 0x1bb   :  { %v1072_v0 = vpop.f32.mrf.mxu1  ;;  %v1935_v14 = vsel %vm1911_vm1, %v1931_v55, 0.0  ;;  %v1936_v30 = vsel %vm1911_vm1, %v1932_v42, 0.0 }
 0x1bc   :  { %v1864_v26 = vadd.f32 %v1863_v35, %v1830_v15  ;;  %v1073_v60 = vadd.f32 %v1072_v0, %v1025_v16  ;;  %v1210_v46 = vpop.f32.mrf.mxu3  ;;  %v1937_v41 = vadd.f32 %v1936_v30, %v1935_v14  ;;  %v1297_v37 = vpop.f32.mrf.mxu2  ;;  %v2752_v14 = vmul.f32 0.0, %v2684_v36 }
 0x1bd   :  { %v1211_v48 = vadd.f32 %v1210_v46, %v1140_v43 }
 0x1be   :  { %v1111_v50 = vadd.f32 %v1110_v10, %v1073_v60  ;;  %1938 = vadd.xlane.f32.xlu1 %v1937_v41 }
 0x1c0   :  { %v1730_v56 = vmul.f32 %v2737_v32, %v1111_v50  ;;  %v1746_v23 = vmul.f32 %v1718_v51, %v1111_v50 }
 0x1c2   :  { %v2744_v25 = vmul.f32 %v1746_v23, %v1111_v50  ;;  %v1835_v28 = vmul.f32 %v2653_v6, %v1730_v56  ;;  %v1164_v38 = vpop.f32.mrf.mxu0 }
 0x1c3   :  { %v1254_v29 = vpop.f32.mrf.mxu1 }
 0x1c4   :  { %v1865_v34 = vadd.f32 %v1864_v26, %v1835_v28  ;;  %v1214_v31 = vpop.f32.mrf.mxu3  ;;  %v1255_v53 = vadd.f32 %v1254_v29, %v1211_v48  ;;  %v1303_v17 = vpop.f32.mrf.mxu2 }
 0x1c5   :  { %v1215_v3 = vadd.f32 %v1214_v31, %v1148_v19 }
 0x1c6   :  { %v1298_v44 = vadd.f32 %v1297_v37, %v1255_v53  ;;  %v1866_v37 = vadd.f32 %v1865_v34, %v2752_v14 }
 0x1c8   :  { %v1867_v23 = vrot.slane %v1866_v37, 4 }
 0x1ca   :  { %v1351_v58 = vpop.f32.mrf.mxu0 }
 0x1cb   :  { %v1259_v43 = vpop.f32.mrf.mxu1  ;;  %v1352_v63 = vadd.f32 %v1351_v58, %v1298_v44 }
 0x1cc   :  { %v1218_v47 = vpop.f32.mrf.mxu3  ;;  %v1260_v7 = vadd.f32 %v1259_v43, %v1215_v3  ;;  %v1309_v39 = vpop.f32.mrf.mxu2 }
 0x1cd   :  { %v1219_v61 = vadd.f32 %v1218_v47, %v1156_v27 }
 0x1ce   :  { %v1304_v5 = vadd.f32 %v1303_v17, %v1260_v7 }
 0x1d2   :  { %v1355_v57 = vpop.f32.mrf.mxu0 }
 0x1d3   :  { %v1264_v35 = vpop.f32.mrf.mxu1  ;;  %v1356_v59 = vadd.f32 %v1355_v57, %v1304_v5 }
 0x1d4   :  { %v1222_v45 = vpop.f32.mrf.mxu3  ;;  %v1265_v20 = vadd.f32 %v1264_v35, %v1219_v61  ;;  %v1315_v10 = vpop.f32.mrf.mxu2 }
 0x1d5   :  { %v1223_v30 = vadd.f32 %v1222_v45, %v1164_v38  ;;  %v1868_v38 = vadd.f32 %v1867_v23, %v1866_v37 }
 0x1d6   :  { %v1310_v11 = vadd.f32 %v1309_v39, %v1265_v20 }
 0x1d7   :  { %v1869_v7 = vrot.slane %v1868_v38, 2 }
 0x1d9   :  { %v1870_v45 = vadd.f32 %v1869_v7, %v1868_v38 }
 0x1da   :  { %v1359_v18 = vpop.f32.mrf.mxu0 }
 0x1db   :  { %v1269_v16 = vpop.f32.mrf.mxu1  ;;  %v1360_v26 = vadd.f32 %v1359_v18, %v1310_v11 }
 0x1dc   :  { %v1389_v2 = vpop.f32.mrf.mxu3  ;;  %v1501_v13 = vpop.f32.mrf.mxu2  ;;  %v1270_v48 = vadd.f32 %v1269_v16, %v1223_v30  ;;  %v1871_v16 = vrot.slane %v1870_v45, 1 }
 0x1dd   :  { %v1390_v54 = vadd.f32 %v1389_v2, %v1352_v63 }
 0x1de   :  { %v1316_v28 = vadd.f32 %v1315_v10, %v1270_v48 }
 0x1df   :  { %v1735_v19 = vmul.f32 %v2697_v21, %v1390_v54 }
 0x1e1   :  { %v1821_v0 = vmul.f32 %v2623_v40, %v1735_v19 }
 0x1e2   :  { %v1363_v50 = vpop.f32.mrf.mxu0 }
 0x1e3   :  { %v1431_v24 = vpop.f32.mrf.mxu1  ;;  %v1364_v31 = vadd.f32 %v1363_v50, %v1316_v28 }
 0x1e4   :  { %v1393_v4 = vpop.f32.mrf.mxu3  ;;  %v1505_v55 = vpop.f32.mrf.mxu2  ;;  %v1502_v20 = vadd.f32 %v1501_v13, %v1431_v24 }
 0x1e5   :  { %v1394_v42 = vadd.f32 %v1393_v4, %v1356_v59  ;;  %v1872_v4 = vadd.f32 %v1871_v16, %v1870_v45 }
 0x1e7   :  { %v1736_v15 = vmul.f32 %v2709_v12, %v1394_v42  ;;  %v1893_v24 = vmul.f32 %v1872_v4, %v2712_v1 }
 0x1e9   :  { %v1826_v27 = vmul.f32 %v2631_v8, %v1736_v15 }
 0x1ea   :  { %v1545_v43 = vpop.f32.mrf.mxu0 }
 0x1eb   :  { %v1873_v60 = vadd.f32 %v1826_v27, %v1821_v0  ;;  %v1439_v9 = vpop.f32.mrf.mxu1  ;;  %v1546_v11 = vadd.f32 %v1545_v43, %v1502_v20 }
 0x1ec   :  { %v1397_v46 = vpop.f32.mrf.mxu3  ;;  %v1509_v41 = vpop.f32.mrf.mxu2  ;;  %v1506_v15 = vadd.f32 %v1505_v55, %v1439_v9 }
 0x1ed   :  { %v1398_v51 = vadd.f32 %v1397_v46, %v1360_v26 }
 0x1ef   :  { %v1737_v56 = vmul.f32 %v2719_v62, %v1398_v51 }
 0x1f1   :  { %v1831_v29 = vmul.f32 %v2643_v33, %v1737_v56 }
 0x1f2   :  { %v1550_v63 = vpop.f32.mrf.mxu0 }
 0x1f3   :  { %v1874_v36 = vadd.f32 %v1873_v60, %v1831_v29  ;;  %v1447_v53 = vpop.f32.mrf.mxu1  ;;  %v1551_v26 = vadd.f32 %v1550_v63, %v1506_v15 }
 0x1f4   :  { %v1401_v17 = vpop.f32.mrf.mxu3  ;;  %v1513_v44 = vpop.f32.mrf.mxu2  ;;  %v1510_v28 = vadd.f32 %v1509_v41, %v1447_v53 }
 0x1f5   :  { %v1402_v3 = vadd.f32 %v1401_v17, %v1364_v31 }
 0x1f7   :  { %v1738_v47 = vmul.f32 %v2737_v32, %v1402_v3 }
 0x1f9   :  { %v1836_v34 = vmul.f32 %v2653_v6, %v1738_v47 }
 0x1fa   :  { %v1555_v48 = vpop.f32.mrf.mxu0 }
 0x1fb   :  { %v1875_v39 = vadd.f32 %v1874_v36, %v1836_v34  ;;  %v1455_v61 = vpop.f32.mrf.mxu1  ;;  %v1556_v55 = vadd.f32 %v1555_v48, %v1510_v28 }
 0x1fc   :  { %v1588_v5 = vpop.f32.mrf.mxu3  ;;  %v1680_v35 = vpop.f32.mrf.mxu2  ;;  %v1514_v43 = vadd.f32 %v1513_v44, %v1455_v61 }
 0x1fd   :  { %v1876_v58 = vadd.f32 %v1875_v39, %v2752_v14  ;;  %v1589_v2 = vadd.f32 %v1588_v5, %v1546_v11 }
 0x1ff   :  { %v1877_v10 = vrot.slane %v1876_v58, 4 }
 0x201   :  { %v1878_v57 = vadd.f32 %v1877_v10, %v1876_v58 }
 0x202   :  { %v1560_v3 = vpop.f32.mrf.mxu0 }
 0x203   :  { %v1879_v54 = vrot.slane %v1878_v57, 2  ;;  %v1642_v19 = vpop.f32.mrf.mxu1  ;;  %v1561_v41 = vadd.f32 %v1560_v3, %v1514_v43 }
 0x204   :  { %v1594_v59 = vpop.f32.mrf.mxu3  ;;  %v1643_v18 = vadd.f32 %v1642_v19, %v1589_v2  ;;  %v1684_v27 = vpop.f32.mrf.mxu2 }
 0x205   :  { %v1880_v42 = vadd.f32 %v1879_v54, %v1878_v57  ;;  %v1595_v46 = vadd.f32 %v1594_v59, %v1551_v26  ;;  %v1901_v54 = vld [vmem:[%s2781_s0 + $0x4] ss:$0 sm:$0xff] }
 0x206   :  { %v1681_v0 = vadd.f32 %v1680_v35, %v1643_v18 }
 0x207   :  { %v1881_v30 = vrot.slane %v1880_v42, 1 }
 0x208   :  { %v1751_v60 = vmul.f32 %v2697_v21, %v1681_v0 }
 0x209   :  { %v1882_v13 = vadd.f32 %v1881_v30, %v1880_v42 }
 0x20a   :  { %v1755_v37 = vadd.f32 %v1751_v60, %v2707_v49 }
 0x20b   :  { %v1646_v50 = vpop.f32.mrf.mxu1  ;;  %v1894_v51 = vadd.f32 %v1893_v24, %v1882_v13 }
 0x20c   :  { %v1647_v56 = vadd.f32 %v1646_v50, %v1595_v46  ;;  %v1600_v23 = vpop.f32.mrf.mxu3  ;;  %v1688_v31 = vpop.f32.mrf.mxu2  ;;  %v1822_v1 = vmul.f32 %v2623_v40, %v1755_v37 }
 0x20d   :  { %v1601_v36 = vadd.f32 %v1600_v23, %v1556_v55 }
 0x20e   :  { %v1685_v29 = vadd.f32 %v1684_v27, %v1647_v56 }
 0x210   :  { %v1752_v9 = vmul.f32 %v2709_v12, %v1685_v29 }
 0x212   :  { %v1756_v21 = vadd.f32 %v1752_v9, %v2722_v22 }
 0x213   :  { %v1650_v17 = vpop.f32.mrf.mxu1 }
 0x214   :  { %v1827_v38 = vmul.f32 %v2631_v8, %v1756_v21  ;;  %v1651_v49 = vadd.f32 %v1650_v17, %v1601_v36  ;;  %v1606_v7 = vpop.f32.mrf.mxu3  ;;  %v1692_v58 = vpop.f32.mrf.mxu2 }
 0x215   :  { %v1607_v39 = vadd.f32 %v1606_v7, %v1561_v41 }
 0x216   :  { %v1883_v47 = vadd.f32 %v1827_v38, %v1822_v1  ;;  %v1689_v34 = vadd.f32 %v1688_v31, %v1651_v49 }
 0x218   :  { %v1753_v53 = vmul.f32 %v2719_v62, %v1689_v34 }
 0x21a   :  { %v1757_v12 = vadd.f32 %v1753_v53, %v2734_v52 }
 0x21b   :  { %v1654_v5 = vpop.f32.mrf.mxu1 }
 0x21c   :  { %v1832_v22 = vmul.f32 %v2643_v33, %v1757_v12  ;;  %v1655_v35 = vadd.f32 %v1654_v5, %v1607_v39 }
 0x21e   :  { %v1884_v40 = vadd.f32 %v1883_v47, %v1832_v22  ;;  %v1693_v45 = vadd.f32 %v1692_v58, %v1655_v35 }
 0x220   :  { %v1754_v8 = vmul.f32 %v2737_v32, %v1693_v45 }
 0x222   :  { %v1758_v44 = vadd.f32 %v1754_v8, %v2744_v25 }
 0x224   :  { %v1837_v61 = vmul.f32 %v2653_v6, %v1758_v44 }
 0x226   :  { %v1885_v20 = vadd.f32 %v1884_v40, %v1837_v61 }
 0x228   :  { %v1886_v10 = vadd.f32 %v1885_v20, %v2752_v14 }
 0x22a   :  { %v1887_v62 = vrot.slane %v1886_v10, 4 }
 0x22c   :  { %v1888_v11 = vadd.f32 %v1887_v62, %v1886_v10 }
 0x22e   :  { %v1889_v57 = vrot.slane %v1888_v11, 2 }
 0x230   :  { %v1890_v52 = vadd.f32 %v1889_v57, %v1888_v11 }
 0x231   :  { %v1939_v6 = vpop.xlane.xlu1 %1938 }
 0x232   :  { %v1891_v63 = vrot.slane %v1890_v52, 1  ;;  %v1940_v59 = vrot.slane %v1939_v6, 4 }
 0x234   :  { %v1892_v16 = vadd.f32 %v1891_v63, %v1890_v52  ;;  %v1941_v14 = vadd.f32 %v1940_v59, %v1939_v6 }
 0x236   :  { %v1895_v2 = vmul.f32 0.003183099, %v1892_v16  ;;  %v1942_v18 = vrot.slane %v1941_v14, 2 }
 0x238   :  { %v1896_v33 = vsub.f32 %v1894_v51, %v1895_v2  ;;  %v1943_v0 = vadd.f32 %v1942_v18, %v1941_v14 }
 0x23a   :  { %v1909_v32 = vmul.f32 %v1896_v33, %v1896_v33  ;;  %v1944_v26 = vrot.slane %v1943_v0, 1 }
 0x23c   :  { %v1910_v19 = vmul.f32 %v1909_v32, %v1901_v54  ;;  %v1945_v24 = vadd.f32 %v1944_v26, %v1943_v0 }
 0x23e   :  { %v1912_v25 = vsel %vm1911_vm1, %v1910_v19, 0.0 }
 0x23f   :  { %1913 = vadd.xlane.f32.xlu0 %v1912_v25 }
 0x2b2   :  { %v1914_v4 = vpop.xlane.xlu0 %1913 }
 0x2b3   :  { %v1915_v42 = vrot.slane %v1914_v4, 4 }
 0x2b5   :  { %v1916_v15 = vadd.f32 %v1915_v42, %v1914_v4 }
 0x2b7   :  { %v1917_v27 = vrot.slane %v1916_v15, 2 }
 0x2b9   :  { %v1918_v30 = vadd.f32 %v1917_v27, %v1916_v15 }
 0x2bb   :  { %v1919_v60 = vrot.slane %v1918_v30, 1 }
 0x2bd   :  { %v1920_v13 = vadd.f32 %v1919_v60, %v1918_v30 }
 0x2bf   :  { %1976 = vpush %v1920_v13 }
 0x2c0   :  { %1978 = vpush %v1945_v24 }
 0x2f0   :  { %s1977_s18 = spop %1976 }
 0x2f1   :  { %s1979_s19 = spop %1978 }
 0x2f2   :  { %s1947_s20 = sadd.f32 %s1979_s19, %s1977_s18 }
 0x2f4   :  { %1949 = sst [smem:[#allocation3]] %s1947_s20 }
 0x2f5   :  { %1958 = dma.smem_to_hbm %s2048_s21, 16, %s1956_s17, [#allocation4]  }
 0x2f6   :  { %2042 = dma.done.wait [#allocation4], 16  }
 0x2f7   :  { %2043 = vsyncadd [#allocation4], 4294967280 }
 0x2f8   :  { %1963 = sfence }
 0x2f9   :  { %1964 = vsyncpa [#allocation4], 1 }

</bundles_post_ra>
